<compile_context>
chip_gen: v7x
topology: tpu7x:2x2x1
jax: 0.10.0
libtpu: 0.0.40
codegen_flags: <defaults>
</compile_context>

<pallas_src>
import functools
import math

import jax
import jax.numpy as jnp
from jax import lax
from jax.experimental import pallas as pl
from jax.experimental.pallas import tpu as pltpu


def _sla_kernel(Bb, L, K, H, N, chunk, fuse_cols,
                h_ref, win_ref, wbc_ref, wdelta_ref, sp_ref, wout_ref, out_ref):
    """One grid step: Bb sequences of length L, flattened to an (M, feat) slab."""
    f32 = jnp.float32
    d_inner = H * N
    M = Bb * L
    D = h_ref.shape[-1]

    h = h_ref[...].reshape(M, D)
    h_c = h.astype(win_ref.dtype)

    # ---- input projection: [x | z]  (fused slice only when 128-lane aligned) ----
    if fuse_cols:
        xz = jnp.dot(h_c, win_ref[...], preferred_element_type=f32)
        x, z = xz[:, :d_inner], xz[:, d_inner:]
    else:
        w_in = win_ref[...]
        x = jnp.dot(h_c, w_in[:, :d_inner], preferred_element_type=f32)
        z = jnp.dot(h_c, w_in[:, d_inner:], preferred_element_type=f32)

    # ---- causal depthwise conv1d: register-resident padded copy (no VMEM scratch) ----
    cw = sp_ref[0:K, :]                                    # (K, d_inner), cw[k,c] = w[c,k]
    x3 = x.reshape(Bb, L, d_inner)
    xp = jnp.concatenate([jnp.zeros((Bb, K - 1, d_inner), f32), x3], axis=1)
    xc = jnp.zeros((Bb, L, d_inner), f32) + sp_ref[K:K + 1, :]        # conv bias
    for k in range(K):                                     # K tiny & static
        xc = xc + xp[:, k:k + L, :] * cw[k:k + 1, :]
    x_act = (xc * jax.nn.sigmoid(xc)).reshape(M, d_inner)             # SiLU

    # ---- SSM parameter projections ----
    xa_c = x_act.astype(wbc_ref.dtype)
    if fuse_cols:
        bc = jnp.dot(xa_c, wbc_ref[...], preferred_element_type=f32)  # [B | C]
        B_raw, C_raw = bc[:, :d_inner], bc[:, d_inner:]
    else:
        w_bc = wbc_ref[...]
        B_raw = jnp.dot(xa_c, w_bc[:, :d_inner], preferred_element_type=f32)
        C_raw = jnp.dot(xa_c, w_bc[:, d_inner:], preferred_element_type=f32)

    # delta path stays f32 end-to-end (bf16 error here would amplify through the scan)
    dl = jnp.dot(x_act, wdelta_ref[...], preferred_element_type=f32)  # (M, H)
    delta = jax.nn.softplus(dl + sp_ref[K + 2:K + 3, :H])             # (M, H)

    # log(a_bar) = delta[:, h] * A[h, :] directly: per-head VPU broadcast-multiply,
    # no tiny-H MXU contraction and no exp()/log() round trip before the scan.
    log_ab = delta[:, 0:1] * sp_ref[K + 3:K + 4, :]
    for hh in range(1, H):
        log_ab = log_ab + delta[:, hh:hh + 1] * sp_ref[K + 3 + hh:K + 4 + hh, :]

    # ---- chunked selective scan ----
    # Within a chunk of `chunk` steps:  cum_t = sum_{s<=t} log a_s,
    #   h_t = exp(cum_t) * (h_carry + sum_{s<=t} B_s * exp(-cum_s)),  y_t = C_t * h_t.
    # The two prefix reductions are (C, C) lower-triangular MXU matmuls; the carry h
    # propagates between chunks, bounding FLOPs, VMEM and the exp(+-cum) range.
    tri = (lax.broadcasted_iota(jnp.int32, (chunk, chunk), 0)
           >= lax.broadcasted_iota(jnp.int32, (chunk, chunk), 1)).astype(f32)
    nchunks = L // chunk
    y_parts = []
    for b in range(Bb):                                    # static; rows b*L .. b*L+L-1
        hb = jnp.zeros((1, d_inner), f32)
        for ci in range(nchunks):
            r0 = b * L + ci * chunk
            la = log_ab[r0:r0 + chunk, :]
            cum = jnp.dot(tri, la, preferred_element_type=f32)        # inclusive cumsum
            P = jnp.exp(cum)
            S = jnp.dot(tri, B_raw[r0:r0 + chunk, :] * jnp.exp(-cum),
                        preferred_element_type=f32)
            h_all = P * (S + hb)                                      # carry folded in
            y_parts.append(C_raw[r0:r0 + chunk, :] * h_all)
            hb = h_all[chunk - 1:chunk, :]
    y = y_parts[0] if len(y_parts) == 1 else jnp.concatenate(y_parts, axis=0)

    # ---- D-skip, SiLU gate, output projection ----
    y_skip = y + sp_ref[K + 1:K + 2, :] * x_act
    gated = y_skip * (z * jax.nn.sigmoid(z))
    out = jnp.dot(gated.astype(wout_ref.dtype), wout_ref[...],
                  preferred_element_type=f32)                         # (M, D)
    out_ref[...] = out.reshape(Bb, L, D).astype(out_ref.dtype)


def _pick_block_batch(B):
    """Largest Bb dividing B that still gives >=4 (>=2 for tiny B) grid steps."""
    target = 4 if B >= 4 else (2 if B >= 2 else 1)
    for bb in range(B, 0, -1):
        if B % bb == 0 and B // bb >= target:
            return bb
    return 1


def _pick_chunk(L, target=256):
    """Largest divisor of L that is <= target (bounds the triangular matmul)."""
    c = min(L, target)
    while L % c:
        c -= 1
    return c


def _vmem_limit_bytes():
    """Generation-aware VMEM budget (leave ~25% headroom for compiler scratch)."""
    try:
        cap = int(pltpu.get_tpu_info().vmem_capacity_bytes)
    except Exception:
        cap = 64 << 20          # conservative (v7x-sized) fallback
    return max(16 << 20, (cap * 3) // 4)


def selective_linear_attention_pallas(hidden_states, p, *, num_heads, d_state,
                                      dt_rank, conv_k, block_batch=None,
                                      compute_dtype=jnp.bfloat16):
    """Full-sequence forward of SelectiveLinearAttention (use_cache=False path)."""
    B, L, D = hidden_states.shape
    H = num_heads
    N = d_state
    d_inner = H * N
    K = conv_k

    Bb = _pick_block_batch(B) if block_batch is None else block_batch
    assert B % Bb == 0, "block_batch must divide batch"
    chunk = _pick_chunk(L)
    fuse_cols = (d_inner % 128 == 0)    # fused [x|z] / [B|C] slicing only when aligned

    # --- host-side fused weight construction (plain JAX, runs once) ---
    W_in = jnp.concatenate([p["W_x"].T, p["W_z"].T], axis=1).astype(compute_dtype)
    wp_t = p["W_xp"].T                                    # (d_inner, dt_rank + 2*d_inner)
    W_bc = wp_t[:, dt_rank:].astype(compute_dtype)        # (d_inner, 2*d_inner) -> [B | C]
    W_delta = (wp_t[:, :dt_rank] @ p["W_dt"].T).astype(jnp.float32)   # (d_inner, H), f32
    W_out = p["W_out"].T.astype(compute_dtype)            # (d_inner, D)

    # A expanded per head: row h holds -exp(A_log)[h] on head h's channels, 0 elsewhere
    cols = jnp.arange(d_inner)
    A_flat = (-jnp.exp(p["A_log"])).reshape(d_inner)      # head-major
    A_exp = jnp.where((cols[None, :] // N) == jnp.arange(H)[:, None],
                      A_flat[None, :], 0.0).astype(jnp.float32)       # (H, d_inner)

    # stacked per-channel params: [conv_w (K rows) | conv_b | D | b_dt(pad) | A_exp (H)]
    bdt_pad = jnp.zeros((1, d_inner), jnp.float32).at[0, :H].set(p["b_dt"])
    sp = jnp.concatenate([p["conv_w"].T, p["conv_b"][None, :], p["D"][None, :],
                          bdt_pad, A_exp], axis=0).astype(jnp.float32)  # (K+3+H, d_inner)

    weights = (W_in, W_bc, W_delta, sp, W_out)
    kernel = functools.partial(_sla_kernel, Bb, L, K, H, N, chunk, fuse_cols)

    def run(single_buffer_weights):
        def wspec(w):
            kw = {}
            if single_buffer_weights:
                # grid-invariant weights: no second pipeline buffer needed
                kw["pipeline_mode"] = pl.Buffered(1)
            return pl.BlockSpec(w.shape, lambda g: (0, 0), **kw)

        in_specs = ([pl.BlockSpec((Bb, L, D), lambda g: (g, 0, 0))]
                    + [wspec(w) for w in weights])
        out = pl.pallas_call(
            kernel,
            out_shape=jax.ShapeDtypeStruct((B, L, D), jnp.float32),
            grid_spec=pltpu.PrefetchScalarGridSpec(
                num_scalar_prefetch=0,
                grid=(B // Bb,),
                in_specs=in_specs,
                out_specs=pl.BlockSpec((Bb, L, D), lambda g: (g, 0, 0)),
            ),
            compiler_params=pltpu.CompilerParams(
                dimension_semantics=("parallel",),
                vmem_limit_bytes=_vmem_limit_bytes()),
        )(hidden_states, *weights)
        return jax.block_until_ready(out)

    try:
        return run(True)
    except Exception:
        # pipeline_mode=pl.Buffered(1) unsupported on this jax build -> default buffering
        return run(False)


def init_params(key, hidden_size, num_heads, d_state, dt_rank, conv_k):
    """Deterministic synthetic parameters matching the module's shapes."""
    d_inner = num_heads * d_state
    keys = jax.random.split(key, 9)

    def lin(k, out_f, in_f):
        bound = 1.0 / math.sqrt(in_f)
        return jax.random.normal(k, (out_f, in_f), jnp.float32) * bound

    params = {
        "W_x": lin(keys[0], d_inner, hidden_size),                       # in_proj_x.weight
        "W_z": lin(keys[1], d_inner, hidden_size),                       # in_proj_z.weight
        "conv_w": jax.random.normal(keys[2], (d_inner, conv_k), jnp.float32) * (1.0 / math.sqrt(conv_k)),
        "conv_b": jax.random.normal(keys[3], (d_inner,), jnp.float32) * (1.0 / math.sqrt(conv_k)),
        "W_xp": lin(keys[4], dt_rank + 2 * d_inner, d_inner),            # x_param_proj.weight
        "W_dt": lin(keys[5], num_heads, dt_rank),                        # dt_proj_head.weight
        "b_dt": jax.random.uniform(keys[6], (num_heads,), jnp.float32,
                                   minval=math.log(0.001), maxval=math.log(0.01)),
        "A_log": jax.random.uniform(keys[7], (num_heads, d_state), jnp.float32,
                                    minval=math.log(0.5), maxval=math.log(0.99)),
        "D": jnp.ones((d_inner,), jnp.float32),
        "W_out": lin(keys[8], hidden_size, d_inner),                     # out_proj.weight
    }
    return params


def selective_linear_attention_ref(hidden_states, p, *, num_heads, d_state, dt_rank, conv_k):
    """Pure-JAX reference matching the PyTorch forward (use_cache=False, recurrent scan)."""
    hp = jax.lax.Precision.HIGHEST
    mm = lambda a, b: jnp.matmul(a, b, precision=hp)
    B, L, D = hidden_states.shape
    d_inner = num_heads * d_state

    x = mm(hidden_states, p["W_x"].T)
    z = mm(hidden_states, p["W_z"].T)

    xp = jnp.pad(x, ((0, 0), (conv_k - 1, 0), (0, 0)))
    xc = sum(xp[:, k:k + L, :] * p["conv_w"][:, k][None, None, :] for k in range(conv_k))
    xc = xc + p["conv_b"][None, None, :]
    x_act = jax.nn.silu(xc)

    params_raw = mm(x_act, p["W_xp"].T)
    dt_feats = params_raw[..., :dt_rank]
    B_raw = params_raw[..., dt_rank:dt_rank + d_inner]
    C_raw = params_raw[..., dt_rank + d_inner:]

    delta = jax.nn.softplus(mm(dt_feats, p["W_dt"].T) + p["b_dt"])       # (B, L, H)
    A = -jnp.exp(p["A_log"])                                             # (H, N)
    A_bar = jnp.exp(delta[..., None] * A[None, None])                    # (B, L, H, N)
    Bt = B_raw.reshape(B, L, num_heads, d_state)
    Ct = C_raw.reshape(B, L, num_heads, d_state)

    def step(h, inp):
        a, b, c = inp
        h = a * h + b
        return h, c * h

    _, ys = lax.scan(step, jnp.zeros((B, num_heads, d_state), jnp.float32),
                     (jnp.moveaxis(A_bar, 1, 0), jnp.moveaxis(Bt, 1, 0), jnp.moveaxis(Ct, 1, 0)))
    y = jnp.moveaxis(ys, 0, 1).reshape(B, L, d_inner)

    y_skip = y + p["D"][None, None, :] * x_act
    gated = y_skip * jax.nn.silu(z)
    return mm(gated, p["W_out"].T)


if __name__ == "__main__":
    # small shapes consistent with the module:
    #   hidden_size=32, num_heads=4, ssm_d_state=16 -> d_inner=64,
    #   ssm_dt_rank=ceil(32/16)=2, ssm_conv_kernel=4, batch=2, seq=8
    hidden_size, num_heads, d_state, conv_k = 32, 4, 16, 4
    dt_rank = math.ceil(hidden_size / 16)
    B, L = 2, 8

    key = jax.random.PRNGKey(0)
    k_in, k_par = jax.random.split(key)
    hidden_states = jax.random.normal(k_in, (B, L, hidden_size), jnp.float32)
    params = init_params(k_par, hidden_size, num_heads, d_state, dt_rank, conv_k)

    ref = selective_linear_attention_ref(
        hidden_states, params,
        num_heads=num_heads, d_state=d_state, dt_rank=dt_rank, conv_k=conv_k)
    ref = jax.block_until_ready(ref)

    # 1) f32 compute path: tight elementwise check against the recurrent reference.
    out_f32 = selective_linear_attention_pallas(
        hidden_states, params, num_heads=num_heads, d_state=d_state,
        dt_rank=dt_rank, conv_k=conv_k, compute_dtype=jnp.float32)
    out_f32 = jax.block_until_ready(out_f32)
    if not jnp.allclose(out_f32, ref, rtol=2e-3, atol=2e-3):
        raise AssertionError(
            f"f32 mismatch: max abs diff = {float(jnp.max(jnp.abs(out_f32 - ref)))}")

    # 2) default bf16 projection path: norm-based sanity bound (weights quantized).
    out_bf16 = selective_linear_attention_pallas(
        hidden_states, params, num_heads=num_heads, d_state=d_state,
        dt_rank=dt_rank, conv_k=conv_k)
    out_bf16 = jax.block_until_ready(out_bf16)
    rel = float(jnp.linalg.norm(out_bf16 - ref) / jnp.linalg.norm(ref))
    if not (rel < 5e-2):
        raise AssertionError(f"bf16 path mismatch: relative Frobenius error = {rel}")

    print("KERNEL_OK")
</pallas_src>

<mosaic_0001>
module attributes {stable_mosaic.version = 11 : i64} {
  func.func @_sla_kernel(%arg0: i32, %arg1: memref<1x8x32xf32, #tpu.memory_space<vmem>>, %arg2: memref<32x128xf32, #tpu.memory_space<vmem>>, %arg3: memref<64x128xf32, #tpu.memory_space<vmem>>, %arg4: memref<64x4xf32, #tpu.memory_space<vmem>>, %arg5: memref<11x64xf32, #tpu.memory_space<vmem>>, %arg6: memref<64x32xf32, #tpu.memory_space<vmem>>, %arg7: memref<1x8x32xf32, #tpu.memory_space<vmem>>) attributes {dimension_semantics = [#tpu.dimension_semantics<parallel>], iteration_bounds = array<i64: 2>, scalar_prefetch = 0 : i64, scratch_operands = 0 : i64, tpu.core_type = #tpu.core_type<tc>, window_params = [{transform_indices = @transform_0, window_bounds = array<i64: 1, 8, 32>}, {pipeline_mode = #tpu.pipeline_mode<synchronous>, transform_indices = @transform_1, window_bounds = array<i64: 32, 128>}, {pipeline_mode = #tpu.pipeline_mode<synchronous>, transform_indices = @transform_2, window_bounds = array<i64: 64, 128>}, {pipeline_mode = #tpu.pipeline_mode<synchronous>, transform_indices = @transform_3, window_bounds = array<i64: 64, 4>}, {pipeline_mode = #tpu.pipeline_mode<synchronous>, transform_indices = @transform_4, window_bounds = array<i64: 11, 64>}, {pipeline_mode = #tpu.pipeline_mode<synchronous>, transform_indices = @transform_5, window_bounds = array<i64: 64, 32>}, {transform_indices = @transform_6, window_bounds = array<i64: 1, 8, 32>}]} {
    %c0 = arith.constant 0 : index
    %c0_0 = arith.constant 0 : index
    %c0_1 = arith.constant 0 : index
    %0 = vector.load %arg1[%c0, %c0_0, %c0_1] : memref<1x8x32xf32, #tpu.memory_space<vmem>>, vector<1x8x32xf32>
    %1 = vector.shape_cast %0 : vector<1x8x32xf32> to vector<8x32xf32>
    %c0_2 = arith.constant 0 : index
    %c0_3 = arith.constant 0 : index
    %2 = vector.load %arg2[%c0_2, %c0_3] : memref<32x128xf32, #tpu.memory_space<vmem>>, vector<32x128xf32>
    %3 = vector.extract_strided_slice %2 {offsets = [0, 0], sizes = [32, 64], strides = [1, 1]} : vector<32x128xf32> to vector<32x64xf32>
    %cst = arith.constant dense<0.000000e+00> : vector<8x64xf32>
    %4 = tpu.matmul %1, %3, %cst {dimension_numbers = #tpu.dot_dimension_numbers<[1], [0], [0], [1], [0, 0, 1, 1], [], []>} : vector<8x32xf32>, vector<32x64xf32>, vector<8x64xf32> -> vector<8x64xf32>
    %5 = vector.extract_strided_slice %2 {offsets = [0, 64], sizes = [32, 64], strides = [1, 1]} : vector<32x128xf32> to vector<32x64xf32>
    %cst_4 = arith.constant dense<0.000000e+00> : vector<8x64xf32>
    %6 = tpu.matmul %1, %5, %cst_4 {dimension_numbers = #tpu.dot_dimension_numbers<[1], [0], [0], [1], [0, 0, 1, 1], [], []>} : vector<8x32xf32>, vector<32x64xf32>, vector<8x64xf32> -> vector<8x64xf32>
    %c0_5 = arith.constant 0 : index
    %c0_6 = arith.constant 0 : index
    %7 = vector.load %arg5[%c0_5, %c0_6] : memref<11x64xf32, #tpu.memory_space<vmem>>, vector<4x64xf32>
    %8 = vector.shape_cast %4 : vector<8x64xf32> to vector<1x8x64xf32>
    %cst_7 = arith.constant 0.000000e+00 : f32
    %9 = vector.broadcast %cst_7 : f32 to vector<1x3x64xf32>
    %10 = tpu.concatenate %9, %8 in 1 : vector<1x3x64xf32>, vector<1x8x64xf32> -> vector<1x11x64xf32>
    %cst_8 = arith.constant 0.000000e+00 : f32
    %11 = vector.broadcast %cst_8 : f32 to vector<1x8x64xf32>
    %c4 = arith.constant 4 : index
    %c0_9 = arith.constant 0 : index
    %12 = vector.load %arg5[%c4, %c0_9] : memref<11x64xf32, #tpu.memory_space<vmem>>, vector<1x64xf32>
    %13 = vector.shape_cast %12 : vector<1x64xf32> to vector<1x1x64xf32>
    %14 = vector.broadcast %13 : vector<1x1x64xf32> to vector<1x8x64xf32>
    %15 = arith.addf %11, %14 : vector<1x8x64xf32>
    %16 = vector.extract_strided_slice %10 {offsets = [0, 0, 0], sizes = [1, 8, 64], strides = [1, 1, 1]} : vector<1x11x64xf32> to vector<1x8x64xf32>
    %17 = vector.extract_strided_slice %7 {offsets = [0, 0], sizes = [1, 64], strides = [1, 1]} : vector<4x64xf32> to vector<1x64xf32>
    %18 = vector.shape_cast %17 : vector<1x64xf32> to vector<1x1x64xf32>
    %19 = vector.broadcast %18 : vector<1x1x64xf32> to vector<1x8x64xf32>
    %20 = arith.mulf %16, %19 : vector<1x8x64xf32>
    %21 = arith.addf %15, %20 : vector<1x8x64xf32>
    %22 = vector.extract_strided_slice %10 {offsets = [0, 1, 0], sizes = [1, 8, 64], strides = [1, 1, 1]} : vector<1x11x64xf32> to vector<1x8x64xf32>
    %23 = vector.extract_strided_slice %7 {offsets = [1, 0], sizes = [1, 64], strides = [1, 1]} : vector<4x64xf32> to vector<1x64xf32>
    %24 = vector.shape_cast %23 : vector<1x64xf32> to vector<1x1x64xf32>
    %25 = vector.broadcast %24 : vector<1x1x64xf32> to vector<1x8x64xf32>
    %26 = arith.mulf %22, %25 : vector<1x8x64xf32>
    %27 = arith.addf %21, %26 : vector<1x8x64xf32>
    %28 = vector.extract_strided_slice %10 {offsets = [0, 2, 0], sizes = [1, 8, 64], strides = [1, 1, 1]} : vector<1x11x64xf32> to vector<1x8x64xf32>
    %29 = vector.extract_strided_slice %7 {offsets = [2, 0], sizes = [1, 64], strides = [1, 1]} : vector<4x64xf32> to vector<1x64xf32>
    %30 = vector.shape_cast %29 : vector<1x64xf32> to vector<1x1x64xf32>
    %31 = vector.broadcast %30 : vector<1x1x64xf32> to vector<1x8x64xf32>
    %32 = arith.mulf %28, %31 : vector<1x8x64xf32>
    %33 = arith.addf %27, %32 : vector<1x8x64xf32>
    %34 = vector.extract_strided_slice %10 {offsets = [0, 3, 0], sizes = [1, 8, 64], strides = [1, 1, 1]} : vector<1x11x64xf32> to vector<1x8x64xf32>
    %35 = vector.extract_strided_slice %7 {offsets = [3, 0], sizes = [1, 64], strides = [1, 1]} : vector<4x64xf32> to vector<1x64xf32>
    %36 = vector.shape_cast %35 : vector<1x64xf32> to vector<1x1x64xf32>
    %37 = vector.broadcast %36 : vector<1x1x64xf32> to vector<1x8x64xf32>
    %38 = arith.mulf %34, %37 : vector<1x8x64xf32>
    %39 = arith.addf %33, %38 : vector<1x8x64xf32>
    %40 = arith.negf %39 : vector<1x8x64xf32>
    %41 = math.exp %40 : vector<1x8x64xf32>
    %cst_10 = arith.constant 1.000000e+00 : f32
    %42 = vector.broadcast %cst_10 : f32 to vector<1x8x64xf32>
    %43 = arith.addf %42, %41 : vector<1x8x64xf32>
    %44 = arith.divf %42, %43 : vector<1x8x64xf32>
    %45 = arith.mulf %39, %44 : vector<1x8x64xf32>
    %46 = vector.shape_cast %45 : vector<1x8x64xf32> to vector<8x64xf32>
    %c0_11 = arith.constant 0 : index
    %c0_12 = arith.constant 0 : index
    %47 = vector.load %arg3[%c0_11, %c0_12] : memref<64x128xf32, #tpu.memory_space<vmem>>, vector<64x128xf32>
    %48 = vector.extract_strided_slice %47 {offsets = [0, 0], sizes = [64, 64], strides = [1, 1]} : vector<64x128xf32> to vector<64x64xf32>
    %cst_13 = arith.constant dense<0.000000e+00> : vector<8x64xf32>
    %49 = tpu.matmul %46, %48, %cst_13 {dimension_numbers = #tpu.dot_dimension_numbers<[1], [0], [0], [1], [0, 0, 1, 1], [], []>} : vector<8x64xf32>, vector<64x64xf32>, vector<8x64xf32> -> vector<8x64xf32>
    %50 = vector.extract_strided_slice %47 {offsets = [0, 64], sizes = [64, 64], strides = [1, 1]} : vector<64x128xf32> to vector<64x64xf32>
    %cst_14 = arith.constant dense<0.000000e+00> : vector<8x64xf32>
    %51 = tpu.matmul %46, %50, %cst_14 {dimension_numbers = #tpu.dot_dimension_numbers<[1], [0], [0], [1], [0, 0, 1, 1], [], []>} : vector<8x64xf32>, vector<64x64xf32>, vector<8x64xf32> -> vector<8x64xf32>
    %c0_15 = arith.constant 0 : index
    %c0_16 = arith.constant 0 : index
    %52 = vector.load %arg4[%c0_15, %c0_16] : memref<64x4xf32, #tpu.memory_space<vmem>>, vector<64x4xf32>
    %cst_17 = arith.constant dense<0.000000e+00> : vector<8x4xf32>
    %53 = tpu.matmul %46, %52, %cst_17 {dimension_numbers = #tpu.dot_dimension_numbers<[1], [0], [0], [1], [0, 0, 1, 1], [], []>} : vector<8x64xf32>, vector<64x4xf32>, vector<8x4xf32> -> vector<8x4xf32>
    %c6 = arith.constant 6 : index
    %c0_18 = arith.constant 0 : index
    %54 = vector.load %arg5[%c6, %c0_18] : memref<11x64xf32, #tpu.memory_space<vmem>>, vector<1x4xf32>
    %55 = vector.broadcast %54 : vector<1x4xf32> to vector<8x4xf32>
    %56 = arith.addf %53, %55 : vector<8x4xf32>
    %cst_19 = arith.constant 0.000000e+00 : f32
    %57 = vector.broadcast %cst_19 : f32 to vector<8x4xf32>
    %58 = arith.maximumf %56, %57 : vector<8x4xf32>
    %59 = vector.broadcast %cst_19 : f32 to vector<8x4xf32>
    %60 = arith.subf %56, %59 : vector<8x4xf32>
    %61 = arith.cmpf one, %60, %60 : vector<8x4xf32>
    %62 = vector.broadcast %cst_19 : f32 to vector<8x4xf32>
    %63 = arith.addf %56, %62 : vector<8x4xf32>
    %64 = math.absf %60 : vector<8x4xf32>
    %cst_20 = arith.constant 0.000000e+00 : f32
    %65 = vector.broadcast %cst_20 : f32 to vector<8x4xf32>
    %66 = arith.subf %65, %64 : vector<8x4xf32>
    %67 = math.exp %66 : vector<8x4xf32>
    %68 = math.log1p %67 : vector<8x4xf32>
    %69 = arith.addf %58, %68 : vector<8x4xf32>
    %70 = arith.select %61, %63, %69 : vector<8x4xi1>, vector<8x4xf32>
    %71 = vector.extract_strided_slice %70 {offsets = [0, 0], sizes = [8, 1], strides = [1, 1]} : vector<8x4xf32> to vector<8x1xf32>
    %c7 = arith.constant 7 : index
    %c0_21 = arith.constant 0 : index
    %72 = vector.load %arg5[%c7, %c0_21] : memref<11x64xf32, #tpu.memory_space<vmem>>, vector<1x64xf32>
    %73 = vector.broadcast %71 : vector<8x1xf32> to vector<8x64xf32>
    %74 = vector.broadcast %72 : vector<1x64xf32> to vector<8x64xf32>
    %75 = arith.mulf %73, %74 : vector<8x64xf32>
    %76 = vector.extract_strided_slice %70 {offsets = [0, 1], sizes = [8, 1], strides = [1, 1]} : vector<8x4xf32> to vector<8x1xf32>
    %c8 = arith.constant 8 : index
    %c0_22 = arith.constant 0 : index
    %77 = vector.load %arg5[%c8, %c0_22] : memref<11x64xf32, #tpu.memory_space<vmem>>, vector<1x64xf32>
    %78 = vector.broadcast %76 : vector<8x1xf32> to vector<8x64xf32>
    %79 = vector.broadcast %77 : vector<1x64xf32> to vector<8x64xf32>
    %80 = arith.mulf %78, %79 : vector<8x64xf32>
    %81 = arith.addf %75, %80 : vector<8x64xf32>
    %82 = vector.extract_strided_slice %70 {offsets = [0, 2], sizes = [8, 1], strides = [1, 1]} : vector<8x4xf32> to vector<8x1xf32>
    %c9 = arith.constant 9 : index
    %c0_23 = arith.constant 0 : index
    %83 = vector.load %arg5[%c9, %c0_23] : memref<11x64xf32, #tpu.memory_space<vmem>>, vector<1x64xf32>
    %84 = vector.broadcast %82 : vector<8x1xf32> to vector<8x64xf32>
    %85 = vector.broadcast %83 : vector<1x64xf32> to vector<8x64xf32>
    %86 = arith.mulf %84, %85 : vector<8x64xf32>
    %87 = arith.addf %81, %86 : vector<8x64xf32>
    %88 = vector.extract_strided_slice %70 {offsets = [0, 3], sizes = [8, 1], strides = [1, 1]} : vector<8x4xf32> to vector<8x1xf32>
    %c10 = arith.constant 10 : index
    %c0_24 = arith.constant 0 : index
    %89 = vector.load %arg5[%c10, %c0_24] : memref<11x64xf32, #tpu.memory_space<vmem>>, vector<1x64xf32>
    %90 = vector.broadcast %88 : vector<8x1xf32> to vector<8x64xf32>
    %91 = vector.broadcast %89 : vector<1x64xf32> to vector<8x64xf32>
    %92 = arith.mulf %90, %91 : vector<8x64xf32>
    %93 = arith.addf %87, %92 : vector<8x64xf32>
    %94 = tpu.iota {dimensions = array<i32: 0>} : vector<8x8xi32>
    %95 = tpu.iota {dimensions = array<i32: 1>} : vector<8x8xi32>
    %96 = arith.cmpi sge, %94, %95 : vector<8x8xi32>
    %97 = arith.extui %96 : vector<8x8xi1> to vector<8x8xi32>
    %98 = arith.sitofp %97 : vector<8x8xi32> to vector<8x8xf32>
    %cst_25 = arith.constant 0.000000e+00 : f32
    %99 = vector.broadcast %cst_25 : f32 to vector<1x64xf32>
    %cst_26 = arith.constant dense<0.000000e+00> : vector<8x64xf32>
    %100 = tpu.matmul %98, %93, %cst_26 {dimension_numbers = #tpu.dot_dimension_numbers<[1], [0], [0], [1], [0, 0, 1, 1], [], []>} : vector<8x8xf32>, vector<8x64xf32>, vector<8x64xf32> -> vector<8x64xf32>
    %101 = math.exp %100 : vector<8x64xf32>
    %cst_27 = arith.constant 0.000000e+00 : f32
    %102 = vector.broadcast %cst_27 : f32 to vector<8x64xf32>
    %103 = arith.subf %102, %100 : vector<8x64xf32>
    %104 = math.exp %103 : vector<8x64xf32>
    %105 = arith.mulf %49, %104 : vector<8x64xf32>
    %cst_28 = arith.constant dense<0.000000e+00> : vector<8x64xf32>
    %106 = tpu.matmul %98, %105, %cst_28 {dimension_numbers = #tpu.dot_dimension_numbers<[1], [0], [0], [1], [0, 0, 1, 1], [], []>} : vector<8x8xf32>, vector<8x64xf32>, vector<8x64xf32> -> vector<8x64xf32>
    %107 = vector.broadcast %99 : vector<1x64xf32> to vector<8x64xf32>
    %108 = arith.addf %106, %107 : vector<8x64xf32>
    %109 = arith.mulf %101, %108 : vector<8x64xf32>
    %110 = arith.mulf %51, %109 : vector<8x64xf32>
    %c5 = arith.constant 5 : index
    %c0_29 = arith.constant 0 : index
    %111 = vector.load %arg5[%c5, %c0_29] : memref<11x64xf32, #tpu.memory_space<vmem>>, vector<1x64xf32>
    %112 = vector.broadcast %111 : vector<1x64xf32> to vector<8x64xf32>
    %113 = arith.mulf %112, %46 : vector<8x64xf32>
    %114 = arith.addf %110, %113 : vector<8x64xf32>
    %115 = arith.negf %6 : vector<8x64xf32>
    %116 = math.exp %115 : vector<8x64xf32>
    %cst_30 = arith.constant 1.000000e+00 : f32
    %117 = vector.broadcast %cst_30 : f32 to vector<8x64xf32>
    %118 = arith.addf %117, %116 : vector<8x64xf32>
    %119 = arith.divf %117, %118 : vector<8x64xf32>
    %120 = arith.mulf %6, %119 : vector<8x64xf32>
    %121 = arith.mulf %114, %120 : vector<8x64xf32>
    %c0_31 = arith.constant 0 : index
    %c0_32 = arith.constant 0 : index
    %122 = vector.load %arg6[%c0_31, %c0_32] : memref<64x32xf32, #tpu.memory_space<vmem>>, vector<64x32xf32>
    %cst_33 = arith.constant dense<0.000000e+00> : vector<8x32xf32>
    %123 = tpu.matmul %121, %122, %cst_33 {dimension_numbers = #tpu.dot_dimension_numbers<[1], [0], [0], [1], [0, 0, 1, 1], [], []>} : vector<8x64xf32>, vector<64x32xf32>, vector<8x32xf32> -> vector<8x32xf32>
    %124 = vector.shape_cast %123 : vector<8x32xf32> to vector<1x8x32xf32>
    %c0_34 = arith.constant 0 : index
    %c0_35 = arith.constant 0 : index
    %c0_36 = arith.constant 0 : index
    %125 = vector.load %arg7[%c0_34, %c0_35, %c0_36] : memref<1x8x32xf32, #tpu.memory_space<vmem>>, vector<1x8x32xf32>
    tpu.vector_store %arg7[%c0_34, %c0_35, %c0_36], %124 {strides = array<i32>} : memref<1x8x32xf32, #tpu.memory_space<vmem>>, vector<1x8x32xf32>,
    return
  }
  func.func @transform_0(%arg0: i32) -> (i32, i32, i32) {
    %c0_i32 = arith.constant 0 : i32
    %c0_i32_0 = arith.constant 0 : i32
    %c0_i32_1 = arith.constant 0 : i32
    return %arg0, %c0_i32, %c0_i32_0 : i32, i32, i32
  }
  func.func @transform_1(%arg0: i32) -> (i32, i32) {
    %c0_i32 = arith.constant 0 : i32
    %c0_i32_0 = arith.constant 0 : i32
    %c0_i32_1 = arith.constant 0 : i32
    return %c0_i32, %c0_i32_0 : i32, i32
  }
  func.func @transform_2(%arg0: i32) -> (i32, i32) {
    %c0_i32 = arith.constant 0 : i32
    %c0_i32_0 = arith.constant 0 : i32
    %c0_i32_1 = arith.constant 0 : i32
    return %c0_i32, %c0_i32_0 : i32, i32
  }
  func.func @transform_3(%arg0: i32) -> (i32, i32) {
    %c0_i32 = arith.constant 0 : i32
    %c0_i32_0 = arith.constant 0 : i32
    %c0_i32_1 = arith.constant 0 : i32
    return %c0_i32, %c0_i32_0 : i32, i32
  }
  func.func @transform_4(%arg0: i32) -> (i32, i32) {
    %c0_i32 = arith.constant 0 : i32
    %c0_i32_0 = arith.constant 0 : i32
    %c0_i32_1 = arith.constant 0 : i32
    return %c0_i32, %c0_i32_0 : i32, i32
  }
  func.func @transform_5(%arg0: i32) -> (i32, i32) {
    %c0_i32 = arith.constant 0 : i32
    %c0_i32_0 = arith.constant 0 : i32
    %c0_i32_1 = arith.constant 0 : i32
    return %c0_i32, %c0_i32_0 : i32, i32
  }
  func.func @transform_6(%arg0: i32) -> (i32, i32, i32) {
    %c0_i32 = arith.constant 0 : i32
    %c0_i32_0 = arith.constant 0 : i32
    %c0_i32_1 = arith.constant 0 : i32
    return %arg0, %c0_i32, %c0_i32_0 : i32, i32, i32
  }
}

module attributes {stable_mosaic.version = 11 : i64} {
  func.func @_sla_kernel(%arg0: i32, %arg1: memref<1x8x32xf32, #tpu.memory_space<vmem>>, %arg2: memref<32x128xf32, #tpu.memory_space<vmem>>, %arg3: memref<64x128xf32, #tpu.memory_space<vmem>>, %arg4: memref<64x4xf32, #tpu.memory_space<vmem>>, %arg5: memref<11x64xf32, #tpu.memory_space<vmem>>, %arg6: memref<64x32xf32, #tpu.memory_space<vmem>>, %arg7: memref<1x8x32xf32, #tpu.memory_space<vmem>>) attributes {dimension_semantics = [#tpu.dimension_semantics<parallel>], iteration_bounds = array<i64: 2>, scalar_prefetch = 0 : i64, scratch_operands = 0 : i64, tpu.core_type = #tpu.core_type<tc>, window_params = [{transform_indices = @transform_0, window_bounds = array<i64: 1, 8, 32>}, {pipeline_mode = #tpu.pipeline_mode<synchronous>, transform_indices = @transform_1, window_bounds = array<i64: 32, 128>}, {pipeline_mode = #tpu.pipeline_mode<synchronous>, transform_indices = @transform_2, window_bounds = array<i64: 64, 128>}, {pipeline_mode = #tpu.pipeline_mode<synchronous>, transform_indices = @transform_3, window_bounds = array<i64: 64, 4>}, {pipeline_mode = #tpu.pipeline_mode<synchronous>, transform_indices = @transform_4, window_bounds = array<i64: 11, 64>}, {pipeline_mode = #tpu.pipeline_mode<synchronous>, transform_indices = @transform_5, window_bounds = array<i64: 64, 32>}, {transform_indices = @transform_6, window_bounds = array<i64: 1, 8, 32>}]} {
    %c0 = arith.constant 0 : index
    %c0_0 = arith.constant 0 : index
    %c0_1 = arith.constant 0 : index
    %0 = vector.load %arg1[%c0, %c0_0, %c0_1] : memref<1x8x32xf32, #tpu.memory_space<vmem>>, vector<1x8x32xf32>
    %1 = vector.shape_cast %0 : vector<1x8x32xf32> to vector<8x32xf32>
    %c0_2 = arith.constant 0 : index
    %c0_3 = arith.constant 0 : index
    %2 = vector.load %arg2[%c0_2, %c0_3] : memref<32x128xf32, #tpu.memory_space<vmem>>, vector<32x128xf32>
    %3 = vector.extract_strided_slice %2 {offsets = [0, 0], sizes = [32, 64], strides = [1, 1]} : vector<32x128xf32> to vector<32x64xf32>
    %cst = arith.constant dense<0.000000e+00> : vector<8x64xf32>
    %4 = tpu.matmul %1, %3, %cst {dimension_numbers = #tpu.dot_dimension_numbers<[1], [0], [0], [1], [0, 0, 1, 1], [], []>} : vector<8x32xf32>, vector<32x64xf32>, vector<8x64xf32> -> vector<8x64xf32>
    %5 = vector.extract_strided_slice %2 {offsets = [0, 64], sizes = [32, 64], strides = [1, 1]} : vector<32x128xf32> to vector<32x64xf32>
    %cst_4 = arith.constant dense<0.000000e+00> : vector<8x64xf32>
    %6 = tpu.matmul %1, %5, %cst_4 {dimension_numbers = #tpu.dot_dimension_numbers<[1], [0], [0], [1], [0, 0, 1, 1], [], []>} : vector<8x32xf32>, vector<32x64xf32>, vector<8x64xf32> -> vector<8x64xf32>
    %c0_5 = arith.constant 0 : index
    %c0_6 = arith.constant 0 : index
    %7 = vector.load %arg5[%c0_5, %c0_6] : memref<11x64xf32, #tpu.memory_space<vmem>>, vector<4x64xf32>
    %8 = vector.shape_cast %4 : vector<8x64xf32> to vector<1x8x64xf32>
    %cst_7 = arith.constant 0.000000e+00 : f32
    %9 = vector.broadcast %cst_7 : f32 to vector<1x3x64xf32>
    %10 = tpu.concatenate %9, %8 in 1 : vector<1x3x64xf32>, vector<1x8x64xf32> -> vector<1x11x64xf32>
    %cst_8 = arith.constant 0.000000e+00 : f32
    %11 = vector.broadcast %cst_8 : f32 to vector<1x8x64xf32>
    %c4 = arith.constant 4 : index
    %c0_9 = arith.constant 0 : index
    %12 = vector.load %arg5[%c4, %c0_9] : memref<11x64xf32, #tpu.memory_space<vmem>>, vector<1x64xf32>
    %13 = vector.shape_cast %12 : vector<1x64xf32> to vector<1x1x64xf32>
    %14 = vector.broadcast %13 : vector<1x1x64xf32> to vector<1x8x64xf32>
    %15 = arith.addf %11, %14 : vector<1x8x64xf32>
    %16 = vector.extract_strided_slice %10 {offsets = [0, 0, 0], sizes = [1, 8, 64], strides = [1, 1, 1]} : vector<1x11x64xf32> to vector<1x8x64xf32>
    %17 = vector.extract_strided_slice %7 {offsets = [0, 0], sizes = [1, 64], strides = [1, 1]} : vector<4x64xf32> to vector<1x64xf32>
    %18 = vector.shape_cast %17 : vector<1x64xf32> to vector<1x1x64xf32>
    %19 = vector.broadcast %18 : vector<1x1x64xf32> to vector<1x8x64xf32>
    %20 = arith.mulf %16, %19 : vector<1x8x64xf32>
    %21 = arith.addf %15, %20 : vector<1x8x64xf32>
    %22 = vector.extract_strided_slice %10 {offsets = [0, 1, 0], sizes = [1, 8, 64], strides = [1, 1, 1]} : vector<1x11x64xf32> to vector<1x8x64xf32>
    %23 = vector.extract_strided_slice %7 {offsets = [1, 0], sizes = [1, 64], strides = [1, 1]} : vector<4x64xf32> to vector<1x64xf32>
    %24 = vector.shape_cast %23 : vector<1x64xf32> to vector<1x1x64xf32>
    %25 = vector.broadcast %24 : vector<1x1x64xf32> to vector<1x8x64xf32>
    %26 = arith.mulf %22, %25 : vector<1x8x64xf32>
    %27 = arith.addf %21, %26 : vector<1x8x64xf32>
    %28 = vector.extract_strided_slice %10 {offsets = [0, 2, 0], sizes = [1, 8, 64], strides = [1, 1, 1]} : vector<1x11x64xf32> to vector<1x8x64xf32>
    %29 = vector.extract_strided_slice %7 {offsets = [2, 0], sizes = [1, 64], strides = [1, 1]} : vector<4x64xf32> to vector<1x64xf32>
    %30 = vector.shape_cast %29 : vector<1x64xf32> to vector<1x1x64xf32>
    %31 = vector.broadcast %30 : vector<1x1x64xf32> to vector<1x8x64xf32>
    %32 = arith.mulf %28, %31 : vector<1x8x64xf32>
    %33 = arith.addf %27, %32 : vector<1x8x64xf32>
    %34 = vector.extract_strided_slice %10 {offsets = [0, 3, 0], sizes = [1, 8, 64], strides = [1, 1, 1]} : vector<1x11x64xf32> to vector<1x8x64xf32>
    %35 = vector.extract_strided_slice %7 {offsets = [3, 0], sizes = [1, 64], strides = [1, 1]} : vector<4x64xf32> to vector<1x64xf32>
    %36 = vector.shape_cast %35 : vector<1x64xf32> to vector<1x1x64xf32>
    %37 = vector.broadcast %36 : vector<1x1x64xf32> to vector<1x8x64xf32>
    %38 = arith.mulf %34, %37 : vector<1x8x64xf32>
    %39 = arith.addf %33, %38 : vector<1x8x64xf32>
    %40 = arith.negf %39 : vector<1x8x64xf32>
    %41 = math.exp %40 : vector<1x8x64xf32>
    %cst_10 = arith.constant 1.000000e+00 : f32
    %42 = vector.broadcast %cst_10 : f32 to vector<1x8x64xf32>
    %43 = arith.addf %42, %41 : vector<1x8x64xf32>
    %44 = arith.divf %42, %43 : vector<1x8x64xf32>
    %45 = arith.mulf %39, %44 : vector<1x8x64xf32>
    %46 = vector.shape_cast %45 : vector<1x8x64xf32> to vector<8x64xf32>
    %c0_11 = arith.constant 0 : index
    %c0_12 = arith.constant 0 : index
    %47 = vector.load %arg3[%c0_11, %c0_12] : memref<64x128xf32, #tpu.memory_space<vmem>>, vector<64x128xf32>
    %48 = vector.extract_strided_slice %47 {offsets = [0, 0], sizes = [64, 64], strides = [1, 1]} : vector<64x128xf32> to vector<64x64xf32>
    %cst_13 = arith.constant dense<0.000000e+00> : vector<8x64xf32>
    %49 = tpu.matmul %46, %48, %cst_13 {dimension_numbers = #tpu.dot_dimension_numbers<[1], [0], [0], [1], [0, 0, 1, 1], [], []>} : vector<8x64xf32>, vector<64x64xf32>, vector<8x64xf32> -> vector<8x64xf32>
    %50 = vector.extract_strided_slice %47 {offsets = [0, 64], sizes = [64, 64], strides = [1, 1]} : vector<64x128xf32> to vector<64x64xf32>
    %cst_14 = arith.constant dense<0.000000e+00> : vector<8x64xf32>
    %51 = tpu.matmul %46, %50, %cst_14 {dimension_numbers = #tpu.dot_dimension_numbers<[1], [0], [0], [1], [0, 0, 1, 1], [], []>} : vector<8x64xf32>, vector<64x64xf32>, vector<8x64xf32> -> vector<8x64xf32>
    %c0_15 = arith.constant 0 : index
    %c0_16 = arith.constant 0 : index
    %52 = vector.load %arg4[%c0_15, %c0_16] : memref<64x4xf32, #tpu.memory_space<vmem>>, vector<64x4xf32>
    %cst_17 = arith.constant dense<0.000000e+00> : vector<8x4xf32>
    %53 = tpu.matmul %46, %52, %cst_17 {dimension_numbers = #tpu.dot_dimension_numbers<[1], [0], [0], [1], [0, 0, 1, 1], [], []>} : vector<8x64xf32>, vector<64x4xf32>, vector<8x4xf32> -> vector<8x4xf32>
    %c6 = arith.constant 6 : index
    %c0_18 = arith.constant 0 : index
    %54 = vector.load %arg5[%c6, %c0_18] : memref<11x64xf32, #tpu.memory_space<vmem>>, vector<1x4xf32>
    %55 = vector.broadcast %54 : vector<1x4xf32> to vector<8x4xf32>
    %56 = arith.addf %53, %55 : vector<8x4xf32>
    %cst_19 = arith.constant 0.000000e+00 : f32
    %57 = vector.broadcast %cst_19 : f32 to vector<8x4xf32>
    %58 = arith.maximumf %56, %57 : vector<8x4xf32>
    %59 = vector.broadcast %cst_19 : f32 to vector<8x4xf32>
    %60 = arith.subf %56, %59 : vector<8x4xf32>
    %61 = arith.cmpf one, %60, %60 : vector<8x4xf32>
    %62 = vector.broadcast %cst_19 : f32 to vector<8x4xf32>
    %63 = arith.addf %56, %62 : vector<8x4xf32>
    %64 = math.absf %60 : vector<8x4xf32>
    %cst_20 = arith.constant 0.000000e+00 : f32
    %65 = vector.broadcast %cst_20 : f32 to vector<8x4xf32>
    %66 = arith.subf %65, %64 : vector<8x4xf32>
    %67 = math.exp %66 : vector<8x4xf32>
    %68 = math.log1p %67 : vector<8x4xf32>
    %69 = arith.addf %58, %68 : vector<8x4xf32>
    %70 = arith.select %61, %63, %69 : vector<8x4xi1>, vector<8x4xf32>
    %71 = vector.extract_strided_slice %70 {offsets = [0, 0], sizes = [8, 1], strides = [1, 1]} : vector<8x4xf32> to vector<8x1xf32>
    %c7 = arith.constant 7 : index
    %c0_21 = arith.constant 0 : index
    %72 = vector.load %arg5[%c7, %c0_21] : memref<11x64xf32, #tpu.memory_space<vmem>>, vector<1x64xf32>
    %73 = vector.broadcast %71 : vector<8x1xf32> to vector<8x64xf32>
    %74 = vector.broadcast %72 : vector<1x64xf32> to vector<8x64xf32>
    %75 = arith.mulf %73, %74 : vector<8x64xf32>
    %76 = vector.extract_strided_slice %70 {offsets = [0, 1], sizes = [8, 1], strides = [1, 1]} : vector<8x4xf32> to vector<8x1xf32>
    %c8 = arith.constant 8 : index
    %c0_22 = arith.constant 0 : index
    %77 = vector.load %arg5[%c8, %c0_22] : memref<11x64xf32, #tpu.memory_space<vmem>>, vector<1x64xf32>
    %78 = vector.broadcast %76 : vector<8x1xf32> to vector<8x64xf32>
    %79 = vector.broadcast %77 : vector<1x64xf32> to vector<8x64xf32>
    %80 = arith.mulf %78, %79 : vector<8x64xf32>
    %81 = arith.addf %75, %80 : vector<8x64xf32>
    %82 = vector.extract_strided_slice %70 {offsets = [0, 2], sizes = [8, 1], strides = [1, 1]} : vector<8x4xf32> to vector<8x1xf32>
    %c9 = arith.constant 9 : index
    %c0_23 = arith.constant 0 : index
    %83 = vector.load %arg5[%c9, %c0_23] : memref<11x64xf32, #tpu.memory_space<vmem>>, vector<1x64xf32>
    %84 = vector.broadcast %82 : vector<8x1xf32> to vector<8x64xf32>
    %85 = vector.broadcast %83 : vector<1x64xf32> to vector<8x64xf32>
    %86 = arith.mulf %84, %85 : vector<8x64xf32>
    %87 = arith.addf %81, %86 : vector<8x64xf32>
    %88 = vector.extract_strided_slice %70 {offsets = [0, 3], sizes = [8, 1], strides = [1, 1]} : vector<8x4xf32> to vector<8x1xf32>
    %c10 = arith.constant 10 : index
    %c0_24 = arith.constant 0 : index
    %89 = vector.load %arg5[%c10, %c0_24] : memref<11x64xf32, #tpu.memory_space<vmem>>, vector<1x64xf32>
    %90 = vector.broadcast %88 : vector<8x1xf32> to vector<8x64xf32>
    %91 = vector.broadcast %89 : vector<1x64xf32> to vector<8x64xf32>
    %92 = arith.mulf %90, %91 : vector<8x64xf32>
    %93 = arith.addf %87, %92 : vector<8x64xf32>
    %94 = tpu.iota {dimensions = array<i32: 0>} : vector<8x8xi32>
    %95 = tpu.iota {dimensions = array<i32: 1>} : vector<8x8xi32>
    %96 = arith.cmpi sge, %94, %95 : vector<8x8xi32>
    %97 = arith.extui %96 : vector<8x8xi1> to vector<8x8xi32>
    %98 = arith.sitofp %97 : vector<8x8xi32> to vector<8x8xf32>
    %cst_25 = arith.constant 0.000000e+00 : f32
    %99 = vector.broadcast %cst_25 : f32 to vector<1x64xf32>
    %cst_26 = arith.constant dense<0.000000e+00> : vector<8x64xf32>
    %100 = tpu.matmul %98, %93, %cst_26 {dimension_numbers = #tpu.dot_dimension_numbers<[1], [0], [0], [1], [0, 0, 1, 1], [], []>} : vector<8x8xf32>, vector<8x64xf32>, vector<8x64xf32> -> vector<8x64xf32>
    %101 = math.exp %100 : vector<8x64xf32>
    %cst_27 = arith.constant 0.000000e+00 : f32
    %102 = vector.broadcast %cst_27 : f32 to vector<8x64xf32>
    %103 = arith.subf %102, %100 : vector<8x64xf32>
    %104 = math.exp %103 : vector<8x64xf32>
    %105 = arith.mulf %49, %104 : vector<8x64xf32>
    %cst_28 = arith.constant dense<0.000000e+00> : vector<8x64xf32>
    %106 = tpu.matmul %98, %105, %cst_28 {dimension_numbers = #tpu.dot_dimension_numbers<[1], [0], [0], [1], [0, 0, 1, 1], [], []>} : vector<8x8xf32>, vector<8x64xf32>, vector<8x64xf32> -> vector<8x64xf32>
    %107 = vector.broadcast %99 : vector<1x64xf32> to vector<8x64xf32>
    %108 = arith.addf %106, %107 : vector<8x64xf32>
    %109 = arith.mulf %101, %108 : vector<8x64xf32>
    %110 = arith.mulf %51, %109 : vector<8x64xf32>
    %c5 = arith.constant 5 : index
    %c0_29 = arith.constant 0 : index
    %111 = vector.load %arg5[%c5, %c0_29] : memref<11x64xf32, #tpu.memory_space<vmem>>, vector<1x64xf32>
    %112 = vector.broadcast %111 : vector<1x64xf32> to vector<8x64xf32>
    %113 = arith.mulf %112, %46 : vector<8x64xf32>
    %114 = arith.addf %110, %113 : vector<8x64xf32>
    %115 = arith.negf %6 : vector<8x64xf32>
    %116 = math.exp %115 : vector<8x64xf32>
    %cst_30 = arith.constant 1.000000e+00 : f32
    %117 = vector.broadcast %cst_30 : f32 to vector<8x64xf32>
    %118 = arith.addf %117, %116 : vector<8x64xf32>
    %119 = arith.divf %117, %118 : vector<8x64xf32>
    %120 = arith.mulf %6, %119 : vector<8x64xf32>
    %121 = arith.mulf %114, %120 : vector<8x64xf32>
    %c0_31 = arith.constant 0 : index
    %c0_32 = arith.constant 0 : index
    %122 = vector.load %arg6[%c0_31, %c0_32] : memref<64x32xf32, #tpu.memory_space<vmem>>, vector<64x32xf32>
    %cst_33 = arith.constant dense<0.000000e+00> : vector<8x32xf32>
    %123 = tpu.matmul %121, %122, %cst_33 {dimension_numbers = #tpu.dot_dimension_numbers<[1], [0], [0], [1], [0, 0, 1, 1], [], []>} : vector<8x64xf32>, vector<64x32xf32>, vector<8x32xf32> -> vector<8x32xf32>
    %124 = vector.shape_cast %123 : vector<8x32xf32> to vector<1x8x32xf32>
    %c0_34 = arith.constant 0 : index
    %c0_35 = arith.constant 0 : index
    %c0_36 = arith.constant 0 : index
    %125 = vector.load %arg7[%c0_34, %c0_35, %c0_36] : memref<1x8x32xf32, #tpu.memory_space<vmem>>, vector<1x8x32xf32>
    tpu.vector_store %arg7[%c0_34, %c0_35, %c0_36], %124 {strides = array<i32>} : memref<1x8x32xf32, #tpu.memory_space<vmem>>, vector<1x8x32xf32>,
    return
  }
  func.func @transform_0(%arg0: i32) -> (i32, i32, i32) {
    %c0_i32 = arith.constant 0 : i32
    %c0_i32_0 = arith.constant 0 : i32
    %c0_i32_1 = arith.constant 0 : i32
    return %arg0, %c0_i32, %c0_i32_0 : i32, i32, i32
  }
  func.func @transform_1(%arg0: i32) -> (i32, i32) {
    %c0_i32 = arith.constant 0 : i32
    %c0_i32_0 = arith.constant 0 : i32
    %c0_i32_1 = arith.constant 0 : i32
    return %c0_i32, %c0_i32_0 : i32, i32
  }
  func.func @transform_2(%arg0: i32) -> (i32, i32) {
    %c0_i32 = arith.constant 0 : i32
    %c0_i32_0 = arith.constant 0 : i32
    %c0_i32_1 = arith.constant 0 : i32
    return %c0_i32, %c0_i32_0 : i32, i32
  }
  func.func @transform_3(%arg0: i32) -> (i32, i32) {
    %c0_i32 = arith.constant 0 : i32
    %c0_i32_0 = arith.constant 0 : i32
    %c0_i32_1 = arith.constant 0 : i32
    return %c0_i32, %c0_i32_0 : i32, i32
  }
  func.func @transform_4(%arg0: i32) -> (i32, i32) {
    %c0_i32 = arith.constant 0 : i32
    %c0_i32_0 = arith.constant 0 : i32
    %c0_i32_1 = arith.constant 0 : i32
    return %c0_i32, %c0_i32_0 : i32, i32
  }
  func.func @transform_5(%arg0: i32) -> (i32, i32) {
    %c0_i32 = arith.constant 0 : i32
    %c0_i32_0 = arith.constant 0 : i32
    %c0_i32_1 = arith.constant 0 : i32
    return %c0_i32, %c0_i32_0 : i32, i32
  }
  func.func @transform_6(%arg0: i32) -> (i32, i32, i32) {
    %c0_i32 = arith.constant 0 : i32
    %c0_i32_0 = arith.constant 0 : i32
    %c0_i32_1 = arith.constant 0 : i32
    return %arg0, %c0_i32, %c0_i32_0 : i32, i32, i32
  }
}

</mosaic_0001>

<bundles_post_ra>
// kernel: tpu_custom_call.1
= control target key start
LH: loop header
LB: loop body
LE: loop exit
PB: predicated region body
PF: predicated region fallthrough
CT: control target
= control target key end

     0   :  { %11 = vsyncpa [#allocation3], 0  ;;  %s1918_s0 = inlined_call_operand.vmem [shape: f32[2,8,32], index: 0, kind: input, shape index: {}]   ;;  %s1919_s1 = inlined_call_operand.vmem [shape: f32[32,128], index: 1, kind: input, shape index: {}]   ;;  %s1920_s2 = inlined_call_operand.vmem [shape: f32[64,128], index: 2, kind: input, shape index: {}]   ;;  %s1921_s3 = inlined_call_operand.vmem [shape: f32[64,4], index: 3, kind: input, shape index: {}]   ;;  %s1922_s4 = inlined_call_operand.vmem [shape: f32[11,64], index: 4, kind: input, shape index: {}]   ;;  %s1923_s5 = inlined_call_operand.vmem [shape: f32[64,32], index: 5, kind: input, shape index: {}]   ;;  %s1924_s6 = inlined_call_operand.hbm [shape: f32[2,8,32], index: 6, kind: output, shape index: {}]  }
   0x1   :  { %13 = vsyncpa [#allocation3 + $0x1], 0  ;;  %s1589_s21 = smov 0   ;;  %s1591_s22 = smov 0  }
   0x2   :  { %s1593_s23 = smov 0   ;;  %s1595_s24 = smov 0  }
   0x3 LB: > { %s1610_s25 = sadd.s32 4294967295, %s1543_s24   ;;  %s1137_s26 = sadd.s32 4294967294, %s1543_s24   ;;  %s1543_s24 = sphi %s1595_s24, %s1930_s24   ;;  %s1539_s23 = sphi %s1593_s23, %s1929_s23   ;;  %s1535_s22 = sphi %s1591_s22, %s1928_s22   ;;  %s1531_s21 = sphi %s1589_s21, %s1927_s21  }
   0x4   : > { %s1614_s27 = sadd.s32 1, %s1543_s24   ;;  %s157_s28 = sadd.s32 1, %s1539_s23 }
   0x5   : > { %s154_s29 = ssub.s32 %s1543_s24, %s1614_s27  ;;  %p167_p0 = scmp.ne.s32.totalorder %s1539_s23, %s1535_s22 }
   0x6   : > { %p155_p1 = scmp.eq.s32.totalorder %s154_s29, 0  ;;  %p168_p2 = scmp.eq.s32.totalorder %s1610_s25, 1 }
   0x7   : > { %p173_p3 = scmp.ne.s32.totalorder %s1535_s22, %s1531_s21  ;;  %p174_p4 = scmp.eq.s32.totalorder %s1137_s26, 1 }
   0x8   : > { %s1625_s30 = scalar_select %p155_p1, %s1539_s23, %s157_s28  }
   0x9   : > { %p1627_p5 = por %p168_p2, %p167_p0  ;;  %p1631_p6 = por %p174_p4, %p173_p3 }
   0xa   : > { %p1140_p7 = scmp.ge.s32.totalorder %s1543_s24, 1  ;;  %p214_p8 = scmp.lt.s32.totalorder %s1543_s24, 3 }
   0xc   : > { %p215_p9 = pnand %p1140_p7, %p214_p8 }
   0xd   : > { %v1640_v0 = vld [vmem:[%s1919_s1] sm:$0xff] (!%p215_p9)  ;;  %v1645_v1 = vld [vmem:[%s1919_s1 + $0x8] sm:$0xff] (!%p215_p9)  ;;  %v1650_v2 = vld [vmem:[%s1919_s1 + $0x10] sm:$0xff] (!%p215_p9)  ;;  %v1545_v3 = vmov (!%p215_p9), 0.0|0.0   ;;  %vm1546_vm0 = vmmov (!%p215_p9), 0   ;;  %v1547_v7 = vmov (!%p215_p9), 0.0   ;;  %v424_v22 = vlaneseq (!%p215_p9) }
   0xe   : > { %218 = sbr.rel (%p215_p9) target bundleno = 1364 (0x554), region = 44  ;;  %1323 = vmatprep.subr.bf16.mxu0 (!%p215_p9), %v1545_v3  ;;  %v1434_v4 = vpack.i.bf16 (!%p215_p9), %v1645_v1, %v1640_v0  ;;  %v1324_v5 = vpack.c.bf16 (!%p215_p9), %v1645_v1, %v1640_v0  ;;  %v1660_v6 = vld [vmem:[%s1919_s1 + $0x18] sm:$0xff] (!%p215_p9)  ;;  %1223 = vmatprep.mubr.msk.f32.mxu0 (!%p215_p9), %vm1546_vm0, %v1547_v7  ;;  %p243_p10 = scmp.lt.s32.totalorder (!%p215_p9), %s1610_s25, 1  ;;  %vm252_vm1 = vcmask (!%p215_p9), 261120   ;;  %v1685_v10 = vld [vmem:[%s1920_s2] sm:$0xff] (!%p215_p9)  ;;  %v1690_v11 = vld [vmem:[%s1920_s2 + $0x8] sm:$0xff] (!%p215_p9) }
   0xf   : > { %1329 = vmatprep.subr.bf16.mxu1 (!%p215_p9), %v1545_v3  ;;  %1234 = vmatprep.mubr.msk.f32.mxu1 (!%p215_p9), %vm1546_vm0, %v1547_v7  ;;  %v1327_v8 = vpack.c.bf16 (!%p215_p9), %v1660_v6, %v1650_v2  ;;  %v1695_v12 = vld [vmem:[%s1920_s2 + $0x10] sm:$0xff] (!%p215_p9)  ;;  %v1336_v13 = vpack.c.bf16 (!%p215_p9), %v1690_v11, %v1685_v10  ;;  %v1702_v14 = vld [vmem:[%s1920_s2 + $0x18] sm:$0xff] (!%p215_p9)  ;;  %v1710_v16 = vld [vmem:[%s1920_s2 + $0x20] sm:$0xff] (!%p215_p9)  ;;  %v1735_v23 = vshrl.u32 (!%p215_p9), %v424_v22, 7  ;;  %vm416_vm2 = vcmask (!%p215_p9), 1042432   ;;  %s1552_s15 = smov (!%p215_p9), 64  }
  0x10   : > { %1325 = vmatpush3.bf16.msra.mxu0 (!%p215_p9), %v1324_v5  ;;  %v1339_v15 = vpack.c.bf16 (!%p215_p9), %v1702_v14, %v1695_v12  ;;  %v1715_v17 = vld [vmem:[%s1920_s2 + $0x28] sm:$0xff] (!%p215_p9)  ;;  %v1723_v19 = vld [vmem:[%s1920_s2 + $0x30] sm:$0xff] (!%p215_p9)  ;;  %v1728_v20 = vld [vmem:[%s1920_s2 + $0x38] sm:$0xff] (!%p215_p9)  ;;  %vm438_vm3 = vcmask (!%p215_p9), 1046528   ;;  %vm452_vm4 = vcmask (!%p215_p9), 1045504   ;;  %vm466_vm5 = vcmask (!%p215_p9), 1044480  }
  0x11   : > { %1326 = vmatprep.subr.bf16.mxu0 (!%p215_p9), %v1545_v3  ;;  %v1342_v18 = vpack.c.bf16 (!%p215_p9), %v1715_v17, %v1710_v16  ;;  %v1345_v21 = vpack.c.bf16 (!%p215_p9), %v1728_v20, %v1723_v19  ;;  %v432_v24 = vsub.s32 (!%p215_p9), 1, %v1735_v23  ;;  %v446_v25 = vsub.s32 (!%p215_p9), 2, %v1735_v23  ;;  %v412_v27 = vld [vmem:[%s1922_s4] sm:$0xf] (!%p215_p9)  ;;  %v1145_v37 = vld [vmem:[%s1922_s4 + $0x4] ss:$0 sm:$0xff] (!%p215_p9) }
  0x12   : > { %v460_v26 = vsub.s32 (!%p215_p9), 3, %v1735_v23  ;;  %v426_v28 = vsub.s32 (!%p215_p9), 0, %v1735_v23  ;;  %v663_v61 = vld [vmem:[%s1921_s3] sm:$0xff] (!%p215_p9)  ;;  %v664_v62 = vld [vmem:[%s1921_s3 + $0x8] sm:$0xff] (!%p215_p9)  ;;  %vm487_vm6 = vcmask (!%p215_p9), 523264   ;;  %vm815_vm10 = vcmask (!%p215_p9), 64512  }
  0x13   : > { %v433_v29 = vrot.slane (!%p215_p9), %v412_v27, %v432_v24  ;;  %v447_v30 = vrot.slane (!%p215_p9), %v412_v27, %v446_v25  ;;  %v1360_v5 = vpack.c.bf16 (!%p215_p9), %v664_v62, %v663_v61  ;;  %v668_v24 = vld [vmem:[%s1921_s3 + $0x28] sm:$0xff] (!%p215_p9)  ;;  %s240_s12 = sand.u32 (!%p215_p9), 1, %s1535_s22   ;;  %s1162_s14 = sshll.u32 (!%p215_p9), %s1610_s25, 7 }
  0x14   : > { %1328 = vmatpush3.bf16.msra.mxu0 (!%p215_p9), %v1327_v8  ;;  %v461_v31 = vrot.slane (!%p215_p9), %v412_v27, %v460_v26  ;;  %v427_v33 = vrot.slane (!%p215_p9), %v412_v27, %v426_v28  ;;  %v669_v26 = vld [vmem:[%s1921_s3 + $0x30] sm:$0xff] (!%p215_p9)  ;;  %v670_v27 = vld [vmem:[%s1921_s3 + $0x38] sm:$0xff] (!%p215_p9)  ;;  %s1141_s13 = sshll.u32 (!%p215_p9), %s240_s12, 3  ;;  %s1875_s19 = scalar_lea.hbm (!%p215_p9), %s1924_s6, %s1162_s14 }
  0x15   : > { %s244_s17 = scalar_select %p243_p10, %s1610_s25, 1  ;;  %1335 = vmatprep.subr.bf16.mxu0 %v1545_v3  ;;  %v1369_v28 = vpack.c.bf16 %v670_v27, %v669_v26 }
  0x16   : > { %s1065_s20 = scalar_lea.sflag [#allocation3], %s240_s12  ;;  %s1553_s25 = smov [#allocation2]  }
  0x17   : > { %s1142_s18 = sshll.u32 %s244_s17, 3  ;;  %s1485_s28 = sshll.u32 %s1553_s25, 4  ;;  %s1486_s28 = int_to_ptr.vmem [resolvable:$false] %s1485_s28 }
  0x18   : > { %s246_s26 = scalar_lea.vmem %s1918_s0, %s1142_s18  ;;  %s1487_s29 = scalar_lea.vmem %s1486_s28, 256 }
  0x19   : > { %v1675_v9 = vld [vmem:[%s246_s26] sm:$0xff] }
  0x1a   : > { %1224 = vmatmul.mubr.msk.f32.vlgmr.msra.gmra.mrb[0].mxu0 %vm252_vm1, %v1675_v9 }
  0x1b   : > { %1253 = vmatprep.mubr.msk.f32.mxu0 %vm1546_vm0, %v1547_v7  ;;  %1337 = vmatpush3.bf16.msra.mxu0 %v1336_v13  ;;  %v665_v13 = vld [vmem:[%s1921_s3 + $0x10] sm:$0xff] }
  0x1c   : > { %1338 = vmatprep.subr.bf16.mxu0 %v1545_v3 }
  0x1f   : > { %1340 = vmatpush3.bf16.msra.mxu0 %v1339_v15  ;;  %v666_v15 = vld [vmem:[%s1921_s3 + $0x18] sm:$0xff] }
  0x20   : > { %1341 = vmatprep.subr.bf16.mxu0 %v1545_v3 }
  0x23   : > { %1343 = vmatpush3.bf16.msra.mxu0 %v1342_v18  ;;  %v1363_v18 = vpack.c.bf16 %v666_v15, %v665_v13 }
  0x24   : > { %1344 = vmatprep.subr.bf16.mxu0 %v1545_v3 }
  0x27   : > { %1346 = vmatpush3.bf16.msra.mxu0 %v1345_v21  ;;  %v667_v21 = vld [vmem:[%s1921_s3 + $0x20] sm:$0xff] }
  0x28   : > { %1359 = vmatprep.subr.bf16.mxu0 %v1545_v3  ;;  %v1366_v25 = vpack.c.bf16 %v668_v24, %v667_v21 }
  0xed   : > { %v322_v32 = vpop.f32.mrb[0].mxu0 }
  0xee   : > { %v414_v34 = vrot.slane %v322_v32, 5  ;;  %v1225_v35 = vpop.f32.mrb[1].mxu0 }
  0xf0   : > { %v417_v36 = vsel %vm416_vm2, 0.0, %v414_v34  ;;  %v435_v38 = vmul.f32 %v433_v29, %v414_v34  ;;  %v449_v39 = vmul.f32 %v447_v30, %v414_v34  ;;  %v463_v40 = vmul.f32 %v461_v31, %v414_v34 }
  0xf1   : > { %v428_v41 = vmul.f32 %v427_v33, %v417_v36  ;;  %v434_v42 = vmul.f32 %v433_v29, %v417_v36  ;;  %v448_v43 = vmul.f32 %v447_v30, %v417_v36  ;;  %v462_v44 = vmul.f32 %v461_v31, %v417_v36  ;;  %v1149_v33 = vld [vmem:[%s1922_s4 + $0x6] ss:$0 sm:$0xff] }
  0xf2   : > { %v440_v45 = vrot.slane %v435_v38, 1  ;;  %v454_v49 = vrot.slane %v449_v39, 2  ;;  %v468_v52 = vrot.slane %v463_v40, 3  ;;  %v1548_v29 = vmov 2  }
  0xf3   : > { %v429_v46 = vadd.f32 %v1145_v37, %v428_v41  ;;  %v439_v47 = vrot.slane %v434_v42, 1  ;;  %v453_v48 = vrot.slane %v448_v43, 2  ;;  %v467_v51 = vrot.slane %v462_v44, 3  ;;  %1432 = vset.pattern.permute.xlu1 %v1548_v29 }
  0xf4   : > { %v1549_v30 = vmov 0  }
  0xf5   : > { %v441_v50 = vsel %vm438_vm3, %v439_v47, %v440_v45  ;;  %v455_v54 = vsel %vm452_vm4, %v453_v48, %v454_v49  ;;  %v469_v56 = vsel %vm466_vm5, %v467_v51, %v468_v52  ;;  %1430 = vset.pattern.permute.xlu0 %v1549_v30  ;;  %v1550_v52 = vmov 3  }
  0xf6   : > { %v443_v53 = vadd.f32 %v441_v50, %v429_v46 }
  0xf8   : > { %v457_v55 = vadd.f32 %v455_v54, %v443_v53  ;;  %v1551_v53 = vmov 1   ;;  %v1439_v54 = vpack.i.bf16 %v1660_v6, %v1650_v2  ;;  %v1459_v2 = vpack.i.bf16 %v1728_v20, %v1723_v19  ;;  %v1152_v6 = vld [vmem:[%s1922_s4 + $0x8] ss:$0 sm:$0xff] }
  0xfa   : > { %v471_v57 = vadd.f32 %v469_v56, %v457_v55  ;;  %v1444_v55 = vpack.i.bf16 %v1690_v11, %v1685_v10  ;;  %v1449_v56 = vpack.i.bf16 %v1702_v14, %v1695_v12  ;;  %v1153_v10 = vld [vmem:[%s1922_s4 + $0x9] ss:$0 sm:$0xff]  ;;  %v811_v14 = vand.u32 127, %v424_v22 }
  0xfc   : > { %v1146_v58 = vmul.f32 -1.442695, %v471_v57  ;;  %vm812_vm9 = vcmp.ge.s32.totalorder %v1735_v23, %v811_v14 }
  0xfd   : > { %v1155_v21 = vsel %vm812_vm9, 1.0, %v1547_v7 }
  0xfe   : > { %1465 = vpow2.f32 %v1146_v58 }
 0x108   : > { %v1466_v59 = vpop.eup %1465 }
 0x109   : > { %v475_v60 = vadd.f32 1.0, %v1466_v59 }
 0x10b   : > { %1467 = vrcp.f32 %v475_v60 }
 0x115   : > { %v1468_v63 = vpop.eup %1467 }
 0x116   : > { %v1753_v8 = vmul.f32 %v1468_v63, %v471_v57  ;;  %v1454_v57 = vpack.i.bf16 %v1715_v17, %v1710_v16  ;;  %v1154_v17 = vld [vmem:[%s1922_s4 + $0xa] ss:$0 sm:$0xff] }
 0x118   : > { %1254 = vmatmul.mubr.msk.f32.vlgmr.msra.gmra.mrb[2].mxu0 %vm487_vm6, %v1753_v8 }
 0x119   : > { %1361 = vmatpush3.bf16.msra.mxu0 %v1360_v5  ;;  %1291 = vmatprep.mubr.msk.f32.mxu0 %vm1546_vm0, %v1547_v7 }
 0x11a   : > { %1362 = vmatprep.subr.bf16.mxu0 %v1545_v3 }
 0x11d   : > { %1364 = vmatpush3.bf16.msra.mxu0 %v1363_v18 }
 0x11e   : > { %1365 = vmatprep.subr.bf16.mxu0 %v1545_v3 }
 0x121   : > { %1367 = vmatpush3.bf16.msra.mxu0 %v1366_v25 }
 0x122   : > { %1368 = vmatprep.subr.bf16.mxu0 %v1545_v3 }
 0x125   : > { %1370 = vmatpush3.bf16.msra.mxu0 %v1369_v28 }
 0x126   : > { %1294 = vmatprep.subr.mxu0 %v1547_v7 }
 0x128   : > { %1292 = vmatmul.mubr.msk.f32.vlgmr.msra.gmra.mrb[4].mxu0 %vm487_vm6, %v1753_v8 }
 0x129   : > { %1296 = vmatprep.mubr.msk.f32.mxu0 %vm1546_vm0, %v1547_v7 }
 0x1eb   : > { %v1785_v31 = vpop.f32.mrb[2].mxu0 }
 0x1ec   : > { %v1255_v32 = vpop.f32.mrb[3].mxu0 }
 0x1fb   : > { %v742_v34 = vpop.f32.mrb[4].mxu0 }
 0x1fc   : > { %v743_v35 = vadd.f32 %v1149_v33, %v742_v34  ;;  %v1293_v36 = vpop.f32.mrb[5].mxu0 }
 0x1fe   : > { %v749_v37 = vand.u32 2147483647, %v743_v35  ;;  %v746_v48 = vmax.f32 %v743_v35, 0.0  ;;  %vm747_vm8 = vcmp.ne.f32.partialorder %v743_v35, %v743_v35 }
 0x200   : > { %v750_v38 = vsub.f32 0.0, %v749_v37 }
 0x202   : > { %v751_v39 = vmul.f32 1.442695, %v750_v38 }
 0x204   : > { %1469 = vpow2.f32 %v751_v39 }
 0x20e   : > { %v1470_v40 = vpop.eup %1469 }
 0x20f   : > { %v753_v41 = vadd.f32 1.0, %v1470_v40  ;;  %v756_v42 = vmul.f32 -0.5, %v1470_v40  ;;  %v759_v44 = vand.u32 2147483647, %v1470_v40 }
 0x211   : > { %1471 = vlog2.f32 %v753_v41  ;;  %v757_v43 = vadd.f32 1.0, %v756_v42  ;;  %vm760_vm7 = vcmp.lt.f32.partialorder %v759_v44, 0.0004427343 }
 0x213   : > { %v758_v47 = vmul.f32 %v1470_v40, %v757_v43 }
 0x21b   : > { %v1472_v45 = vpop.eup %1471 }
 0x21c   : > { %v755_v46 = vmul.f32 0.6931472, %v1472_v45 }
 0x21e   : > { %v761_v49 = vsel %vm760_vm7, %v758_v47, %v755_v46  ;;  %v982_v46 = vld [vmem:[%s1923_s5] sm:$0xff]  ;;  %v983_v47 = vld [vmem:[%s1923_s5 + $0x8] sm:$0xff] }
 0x21f   : > { %v762_v50 = vadd.f32 %v761_v49, %v746_v48 }
 0x221   : > { %v763_v51 = vsel %vm747_vm8, %v743_v35, %v762_v50  ;;  %v1372_v50 = vpack.c.bf16 %v983_v47, %v982_v46 }
 0x222   : > { %788 = vperm.xlu1 %1432, %v763_v51   ;;  %767 = vperm.xlu0 %1430, %v763_v51  }
 0x226   : > { %1433 = vset.pattern.permute.xlu1 %v1550_v52  ;;  %1431 = vset.pattern.permute.xlu0 %v1551_v53 }
 0x227   : > { %799 = vperm.xlu1 %1433, %v763_v51   ;;  %777 = vperm.xlu0 %1431, %v763_v51   ;;  %v984_v51 = vld [vmem:[%s1923_s5 + $0x10] sm:$0xff] }
 0x22b   : > { %1435 = vrot.lane.b32.xlu1 %v1434_v4, %s1552_s15  ;;  %1440 = vrot.lane.b32.xlu0 %v1439_v54, %s1552_s15  ;;  %v1151_v4 = vld [vmem:[%s1922_s4 + $0x7] ss:$0 sm:$0xff] }
 0x22c   : > { %1464 = vset.pattern.permute.xlu0 %v1550_v52  ;;  %v985_v52 = vld [vmem:[%s1923_s5 + $0x18] sm:$0xff] }
 0x22d   : > { %v1375_v53 = vpack.c.bf16 %v985_v52, %v984_v51 }
 0x22f   : > { %1445 = vrot.lane.b32.xlu1 %v1444_v55, %s1552_s15  ;;  %1450 = vrot.lane.b32.xlu0 %v1449_v56, %s1552_s15  ;;  %v986_v55 = vld [vmem:[%s1923_s5 + $0x20] sm:$0xff]  ;;  %v987_v56 = vld [vmem:[%s1923_s5 + $0x28] sm:$0xff] }
 0x233   : > { %1455 = vrot.lane.b32.xlu1 %v1454_v57, %s1552_s15  ;;  %1460 = vrot.lane.b32.xlu0 %v1459_v2, %s1552_s15  ;;  %v1378_v57 = vpack.c.bf16 %v987_v56, %v986_v55  ;;  %v989_v2 = vld [vmem:[%s1923_s5 + $0x38] sm:$0xff]  ;;  %s242_s15 = scalar_lea.vmem [#allocation2], %s1141_s13 }
 0x234   : > { %s1078_s16 = sshll.u32 %s242_s15, 4  ;;  %s1877_s16 = int_to_ptr.vmem [resolvable:$true] %s1078_s16 }
 0x235   : > { %s1481_s26 = scalar_lea.vmem %s1877_s16, 128  ;;  %p1488_p0 = scmp.lt.s32.totalorder %s1877_s16, %s1486_s28 }
 0x236   : > { %p1482_p11 = scmp.ne.s32.totalorder %s1877_s16, %s1481_s26  ;;  %p1489_p1 = scmp.lt.s32.totalorder %s1487_s29, %s1481_s26 }
 0x238   : > { %p1483_p12 = pnand %p1482_p11, %p1627_p5  ;;  %p1490_p2 = por %p1489_p1, %p1488_p0 }
 0x23a   : > { %p1484_p13 = pneg %p1483_p12 }
 0x23c   : > { %p1491_p3 = pnand %p1490_p2, %p1484_p13 }
 0x2a1   : > { %v789_v0 = vpop.permute.xlu1 %788  ;;  %v768_v1 = vpop.permute.xlu0 %767 }
 0x2a2   : > { %v774_v16 = vmul.f32 %v1151_v4, %v768_v1  ;;  %v795_v20 = vmul.f32 %v1153_v10, %v789_v0 }
 0x2a6   : > { %v800_v11 = vpop.permute.xlu1 %799  ;;  %v778_v12 = vpop.permute.xlu0 %777 }
 0x2a7   : > { %v784_v19 = vmul.f32 %v1152_v6, %v778_v12  ;;  %v806_v59 = vmul.f32 %v1154_v17, %v800_v11  ;;  %v1158_v12 = vld [vmem:[%s1922_s4 + $0x5] ss:$0 sm:$0xff] }
 0x2a9   : > { %v785_v58 = vadd.f32 %v784_v19, %v774_v16 }
 0x2aa   : > { %v1436_v60 = vpop.permute.xlu1 %1435  ;;  %v1441_v61 = vpop.permute.xlu0 %1440 }
 0x2ab   : > { %v796_v62 = vadd.f32 %v795_v20, %v785_v58  ;;  %v1438_v63 = vunpack.i.h.bf16 %v1436_v60  ;;  %v1437_v5 = vunpack.i.l.bf16 %v1436_v60  ;;  %v1443_v13 = vunpack.i.h.bf16 %v1441_v61 }
 0x2ac   : > { %v1442_v15 = vunpack.i.l.bf16 %v1441_v61  ;;  %v972_v20 = vmul.f32 %v1158_v12, %v1753_v8 }
 0x2ad   : > { %v807_v18 = vadd.f32 %v806_v59, %v796_v62  ;;  %v1330_v22 = vpack.c.bf16 %v1438_v63, %v1437_v5 }
 0x2ae   : > { %v1446_v24 = vpop.permute.xlu1 %1445  ;;  %v1333_v25 = vpack.c.bf16 %v1443_v13, %v1442_v15  ;;  %v1451_v23 = vpop.permute.xlu0 %1450 }
 0x2af   : > { %1331 = vmatpush3.bf16.msra.mxu1 %v1330_v22  ;;  %1295 = vmatpush3.msra.mxu0 %v807_v18  ;;  %v1448_v26 = vunpack.i.h.bf16 %v1446_v24  ;;  %v1447_v27 = vunpack.i.l.bf16 %v1446_v24  ;;  %v1453_v29 = vunpack.i.h.bf16 %v1451_v23  ;;  %v1452_v30 = vunpack.i.l.bf16 %v1451_v23 }
 0x2b0   : > { %1297 = vmatmul.mubr.msk.f32.vlgmr.msra.gmra.mrb[6].mxu0 %vm815_vm10, %v1155_v21  ;;  %1332 = vmatprep.subr.bf16.mxu1 %v1545_v3 }
 0x2b1   : > { %v1348_v28 = vpack.c.bf16 %v1448_v26, %v1447_v27  ;;  %v1351_v33 = vpack.c.bf16 %v1453_v29, %v1452_v30 }
 0x2b2   : > { %v1456_v32 = vpop.permute.xlu1 %1455  ;;  %v1461_v36 = vpop.permute.xlu0 %1460 }
 0x2b3   : > { %1334 = vmatpush3.bf16.msra.mxu1 %v1333_v25  ;;  %v1458_v34 = vunpack.i.h.bf16 %v1456_v32  ;;  %v1457_v35 = vunpack.i.l.bf16 %v1456_v32  ;;  %v1463_v38 = vunpack.i.h.bf16 %v1461_v36  ;;  %v1462_v39 = vunpack.i.l.bf16 %v1461_v36 }
 0x2b4   : > { %1347 = vmatprep.subr.bf16.mxu1 %v1545_v3 }
 0x2b5   : > { %v1354_v37 = vpack.c.bf16 %v1458_v34, %v1457_v35  ;;  %v1357_v40 = vpack.c.bf16 %v1463_v38, %v1462_v39 }
 0x2b6   : > { %1235 = vmatmul.mubr.msk.f32.vlgmr.msra.gmra.mrb[0].mxu1 %vm252_vm1, %v1675_v9 }
 0x2b7   : > { %1349 = vmatpush3.bf16.msra.mxu1 %v1348_v28  ;;  %1272 = vmatprep.mubr.msk.f32.mxu1 %vm1546_vm0, %v1547_v7 }
 0x2b8   : > { %1350 = vmatprep.subr.bf16.mxu1 %v1545_v3 }
 0x2bb   : > { %1352 = vmatpush3.bf16.msra.mxu1 %v1351_v33 }
 0x2bc   : > { %1353 = vmatprep.subr.bf16.mxu1 %v1545_v3 }
 0x2bf   : > { %1355 = vmatpush3.bf16.msra.mxu1 %v1354_v37 }
 0x2c0   : > { %1356 = vmatprep.subr.bf16.mxu1 %v1545_v3 }
 0x2c3   : > { %1358 = vmatpush3.bf16.msra.mxu1 %v1357_v40 }
 0x2c4   : > { %1299 = vmatprep.subr.mxu1 %v1547_v7 }
 0x2c6   : > { %1273 = vmatmul.mubr.msk.f32.vlgmr.msra.gmra.mrb[2].mxu1 %vm487_vm6, %v1753_v8 }
 0x2c7   : > { %1301 = vmatprep.mubr.msk.f32.mxu1 %vm1546_vm0, %v1547_v7 }
 0x383   : > { %v885_v9 = vpop.f32.mrb[6].mxu0 }
 0x384   : > { %v891_v41 = vsub.f32 0.0, %v885_v9  ;;  %v1298_v42 = vpop.f32.mrb[7].mxu0  ;;  %v889_v6 = vmul.f32 1.442695, %v885_v9 }
 0x386   : > { %v892_v43 = vmul.f32 1.442695, %v891_v41 }
 0x388   : > { %1473 = vpow2.f32 %v892_v43 }
 0x389   : > { %v408_v44 = vpop.f32.mrb[0].mxu1 }
 0x38a   : > { %v1236_v45 = vpop.f32.mrb[1].mxu1  ;;  %v1159_v1 = vmul.f32 -1.442695, %v408_v44 }
 0x38c   : > { %1475 = vpow2.f32 %v1159_v1 }
 0x38d   : > { %1477 = vpow2.f32 %v889_v6 }
 0x392   : > { %v1474_v48 = vpop.eup %1473 }
 0x393   : > { %v894_v49 = vmul.f32 %v1474_v48, %v1785_v31 }
 0x395   : > { %1300 = vmatpush3.msra.mxu1 %v894_v49 }
 0x396   : > { %1302 = vmatmul.mubr.msk.f32.vlgmr.msra.gmra.mrb[4].mxu1 %vm815_vm10, %v1155_v21  ;;  %1371 = vmatprep.subr.bf16.mxu1 %v1545_v3  ;;  %v1476_v4 = vpop.eup %1475 }
 0x397   : > { %1373 = vmatpush3.bf16.msra.mxu1 %v1372_v50  ;;  %1320 = vmatprep.mubr.msk.f32.mxu1 %vm1546_vm0, %v1547_v7  ;;  %v988_v7 = vld [vmem:[%s1923_s5 + $0x30] sm:$0xff]  ;;  %v977_v10 = vadd.f32 1.0, %v1476_v4 }
 0x398   : > { %1374 = vmatprep.subr.bf16.mxu1 %v1545_v3  ;;  %v1381_v0 = vpack.c.bf16 %v989_v2, %v988_v7 }
 0x399   : > { %v659_v31 = vpop.f32.mrb[2].mxu1  ;;  %1479 = vrcp.f32 %v977_v10 }
 0x39a   : > { %v1274_v54 = vpop.f32.mrb[3].mxu1 }
 0x39b   : > { %1376 = vmatpush3.bf16.msra.mxu1 %v1375_v53 }
 0x39c   : > { %1377 = vmatprep.subr.bf16.mxu1 %v1545_v3 }
 0x39f   : > { %1379 = vmatpush3.bf16.msra.mxu1 %v1378_v57 }
 0x3a0   : > { %1380 = vmatprep.subr.bf16.mxu1 %v1545_v3  ;;  %v1478_v3 = vpop.eup %1477 }
 0x3a3   : > { %1382 = vmatpush3.bf16.msra.mxu1 %v1381_v0  ;;  %v1480_v17 = vpop.eup %1479 }
 0x3a4   : > { %v980_v58 = vmul.f32 %v1480_v17, %v408_v44 }
 0x469   : > { %v961_v11 = vpop.f32.mrb[4].mxu1 }
 0x46a   : > { %v965_v14 = vmul.f32 %v1478_v3, %v961_v11  ;;  %v1303_v16 = vpop.f32.mrb[5].mxu1 }
 0x46c   : > { %v966_v19 = vmul.f32 %v965_v14, %v659_v31 }
 0x46e   : > { %v973_v59 = vadd.f32 %v972_v20, %v966_v19 }
 0x470   : > { %v981_v60 = vmul.f32 %v980_v58, %v973_v59 }
 0x472   : > { %1321 = vmatmul.mubr.msk.f32.vlgmr.msra.gmra.mrb[6].mxu1 %vm487_vm6, %v981_v60 }
 0x545   : > { %v1059_v8 = vpop.f32.mrb[6].mxu1 }
 0x546   : > { %1063 = vst.msk [vmem:[%s242_s15] sm:$0xff] %vm252_vm1, %v1059_v8  ;;  %v1322_v61 = vpop.f32.mrb[7].mxu1 }
 0x547   : > { %1494 = shalt.err (!%p1491_p3)
}
 0x548   : > { %s1495_s9 = scalar_lea.hbm %s1875_s19, 128  ;;  %s1499_s12 = scalar_lea.hbm %s1924_s6, 256 }
 0x549   : > { %p1496_p4 = scmp.ne.s32.totalorder %s1875_s19, %s1495_s9  ;;  %p1500_p9 = scmp.lt.u32.totalorder %s1875_s19, %s1924_s6 }
 0x54a   : > { %p1501_p10 = scmp.lt.u32.totalorder %s1499_s12, %s1495_s9  ;;  %p1503_p12 = scmp.lt.u32.totalorder %s1495_s9, %s1875_s19 }
 0x54b   : > { %p1497_p7 = pnand %p1496_p4, %p1627_p5 }
 0x54c   : > { %p1502_p11 = por %p1501_p10, %p1500_p9 }
 0x54d   : > { %p1498_p8 = pneg %p1497_p7 }
 0x54e   : > { %p1504_p13 = por %p1503_p12, %p1502_p11 }
 0x550   : > { %p1505_p0 = pnand %p1504_p13, %p1498_p8 }
 0x552   : > { %1508 = shalt.err (!%p1505_p0)
}
 0x553   : > { %1383 = dma.vmem_to_hbm [thread:$0]  (%p1627_p5), %s1877_s16, 128, %s1875_s19, %s1065_s20  }
 0x554 PF: > { %p1389_p1 = scmp.ge.s32.totalorder %s1543_s24, 2  ;;  %s1090_s15 = sand.u32 1, %s1531_s21  }
 0x555   : > { %s1091_s17 = scalar_lea.sflag [#allocation3], %s1090_s15 }
 0x556   : > { %p1386_p2 = pnand %p1389_p1, %p1631_p6 }
 0x558   : > { %1526 = dma.done.wait (!%p1386_p2), %s1091_s17, 128  }
 0x559   : > { %1528 = vsyncadd (!%p1386_p2), %s1091_s17, 4294967168  ;;  %p16_p3 = scmp.ge.s32.totalorder %s1614_s27, 4   ;;  %s1927_s21 = smov %s1535_s22 }
 0x55a   : > { %s1928_s22 = smov %s1539_s23  ;;  %s1929_s23 = smov %s1625_s30 }
 0x55b   : > { %s1930_s24 = smov %s1614_s27  ;;  %18 = sbr.rel (!%p16_p3) target bundleno = 3 (0x3), region = 79 }
 0x562   :  { %1096 = vsyncpa [#allocation3], 1 }
 0x563   :  { %1098 = vsyncpa [#allocation3 + $0x1], 1 }

// kernel: tpu_custom_call.1
= control target key start
LH: loop header
LB: loop body
LE: loop exit
PB: predicated region body
PF: predicated region fallthrough
CT: control target
= control target key end

     0   :  { %11 = vsyncpa [#allocation3], 0  ;;  %s1918_s0 = inlined_call_operand.vmem [shape: f32[2,8,32], index: 0, kind: input, shape index: {}]   ;;  %s1919_s1 = inlined_call_operand.vmem [shape: f32[32,128], index: 1, kind: input, shape index: {}]   ;;  %s1920_s2 = inlined_call_operand.vmem [shape: f32[64,128], index: 2, kind: input, shape index: {}]   ;;  %s1921_s3 = inlined_call_operand.vmem [shape: f32[64,4], index: 3, kind: input, shape index: {}]   ;;  %s1922_s4 = inlined_call_operand.vmem [shape: f32[11,64], index: 4, kind: input, shape index: {}]   ;;  %s1923_s5 = inlined_call_operand.vmem [shape: f32[64,32], index: 5, kind: input, shape index: {}]   ;;  %s1924_s6 = inlined_call_operand.hbm [shape: f32[2,8,32], index: 6, kind: output, shape index: {}]  }
   0x1   :  { %13 = vsyncpa [#allocation3 + $0x1], 0  ;;  %s1589_s21 = smov 0   ;;  %s1591_s22 = smov 0  }
   0x2   :  { %s1593_s23 = smov 0   ;;  %s1595_s24 = smov 0  }
   0x3 LB: > { %s1610_s25 = sadd.s32 4294967295, %s1543_s24   ;;  %s1137_s26 = sadd.s32 4294967294, %s1543_s24   ;;  %s1543_s24 = sphi %s1595_s24, %s1930_s24   ;;  %s1539_s23 = sphi %s1593_s23, %s1929_s23   ;;  %s1535_s22 = sphi %s1591_s22, %s1928_s22   ;;  %s1531_s21 = sphi %s1589_s21, %s1927_s21  }
   0x4   : > { %s1614_s27 = sadd.s32 1, %s1543_s24   ;;  %s157_s28 = sadd.s32 1, %s1539_s23 }
   0x5   : > { %s154_s29 = ssub.s32 %s1543_s24, %s1614_s27  ;;  %p167_p0 = scmp.ne.s32.totalorder %s1539_s23, %s1535_s22 }
   0x6   : > { %p155_p1 = scmp.eq.s32.totalorder %s154_s29, 0  ;;  %p168_p2 = scmp.eq.s32.totalorder %s1610_s25, 1 }
   0x7   : > { %p173_p3 = scmp.ne.s32.totalorder %s1535_s22, %s1531_s21  ;;  %p174_p4 = scmp.eq.s32.totalorder %s1137_s26, 1 }
   0x8   : > { %s1625_s30 = scalar_select %p155_p1, %s1539_s23, %s157_s28  }
   0x9   : > { %p1627_p5 = por %p168_p2, %p167_p0  ;;  %p1631_p6 = por %p174_p4, %p173_p3 }
   0xa   : > { %p1140_p7 = scmp.ge.s32.totalorder %s1543_s24, 1  ;;  %p214_p8 = scmp.lt.s32.totalorder %s1543_s24, 3 }
   0xc   : > { %p215_p9 = pnand %p1140_p7, %p214_p8 }
   0xd   : > { %v1640_v0 = vld [vmem:[%s1919_s1] sm:$0xff] (!%p215_p9)  ;;  %v1645_v1 = vld [vmem:[%s1919_s1 + $0x8] sm:$0xff] (!%p215_p9)  ;;  %v1650_v2 = vld [vmem:[%s1919_s1 + $0x10] sm:$0xff] (!%p215_p9)  ;;  %v1545_v3 = vmov (!%p215_p9), 0.0|0.0   ;;  %vm1546_vm0 = vmmov (!%p215_p9), 0   ;;  %v1547_v7 = vmov (!%p215_p9), 0.0   ;;  %v424_v22 = vlaneseq (!%p215_p9) }
   0xe   : > { %218 = sbr.rel (%p215_p9) target bundleno = 1364 (0x554), region = 44  ;;  %1323 = vmatprep.subr.bf16.mxu0 (!%p215_p9), %v1545_v3  ;;  %v1434_v4 = vpack.i.bf16 (!%p215_p9), %v1645_v1, %v1640_v0  ;;  %v1324_v5 = vpack.c.bf16 (!%p215_p9), %v1645_v1, %v1640_v0  ;;  %v1660_v6 = vld [vmem:[%s1919_s1 + $0x18] sm:$0xff] (!%p215_p9)  ;;  %1223 = vmatprep.mubr.msk.f32.mxu0 (!%p215_p9), %vm1546_vm0, %v1547_v7  ;;  %p243_p10 = scmp.lt.s32.totalorder (!%p215_p9), %s1610_s25, 1  ;;  %vm252_vm1 = vcmask (!%p215_p9), 261120   ;;  %v1685_v10 = vld [vmem:[%s1920_s2] sm:$0xff] (!%p215_p9)  ;;  %v1690_v11 = vld [vmem:[%s1920_s2 + $0x8] sm:$0xff] (!%p215_p9) }
   0xf   : > { %1329 = vmatprep.subr.bf16.mxu1 (!%p215_p9), %v1545_v3  ;;  %1234 = vmatprep.mubr.msk.f32.mxu1 (!%p215_p9), %vm1546_vm0, %v1547_v7  ;;  %v1327_v8 = vpack.c.bf16 (!%p215_p9), %v1660_v6, %v1650_v2  ;;  %v1695_v12 = vld [vmem:[%s1920_s2 + $0x10] sm:$0xff] (!%p215_p9)  ;;  %v1336_v13 = vpack.c.bf16 (!%p215_p9), %v1690_v11, %v1685_v10  ;;  %v1702_v14 = vld [vmem:[%s1920_s2 + $0x18] sm:$0xff] (!%p215_p9)  ;;  %v1710_v16 = vld [vmem:[%s1920_s2 + $0x20] sm:$0xff] (!%p215_p9)  ;;  %v1735_v23 = vshrl.u32 (!%p215_p9), %v424_v22, 7  ;;  %vm416_vm2 = vcmask (!%p215_p9), 1042432   ;;  %s1552_s15 = smov (!%p215_p9), 64  }
  0x10   : > { %1325 = vmatpush3.bf16.msra.mxu0 (!%p215_p9), %v1324_v5  ;;  %v1339_v15 = vpack.c.bf16 (!%p215_p9), %v1702_v14, %v1695_v12  ;;  %v1715_v17 = vld [vmem:[%s1920_s2 + $0x28] sm:$0xff] (!%p215_p9)  ;;  %v1723_v19 = vld [vmem:[%s1920_s2 + $0x30] sm:$0xff] (!%p215_p9)  ;;  %v1728_v20 = vld [vmem:[%s1920_s2 + $0x38] sm:$0xff] (!%p215_p9)  ;;  %vm438_vm3 = vcmask (!%p215_p9), 1046528   ;;  %vm452_vm4 = vcmask (!%p215_p9), 1045504   ;;  %vm466_vm5 = vcmask (!%p215_p9), 1044480  }
  0x11   : > { %1326 = vmatprep.subr.bf16.mxu0 (!%p215_p9), %v1545_v3  ;;  %v1342_v18 = vpack.c.bf16 (!%p215_p9), %v1715_v17, %v1710_v16  ;;  %v1345_v21 = vpack.c.bf16 (!%p215_p9), %v1728_v20, %v1723_v19  ;;  %v432_v24 = vsub.s32 (!%p215_p9), 1, %v1735_v23  ;;  %v446_v25 = vsub.s32 (!%p215_p9), 2, %v1735_v23  ;;  %v412_v27 = vld [vmem:[%s1922_s4] sm:$0xf] (!%p215_p9)  ;;  %v1145_v37 = vld [vmem:[%s1922_s4 + $0x4] ss:$0 sm:$0xff] (!%p215_p9) }
  0x12   : > { %v460_v26 = vsub.s32 (!%p215_p9), 3, %v1735_v23  ;;  %v426_v28 = vsub.s32 (!%p215_p9), 0, %v1735_v23  ;;  %v663_v61 = vld [vmem:[%s1921_s3] sm:$0xff] (!%p215_p9)  ;;  %v664_v62 = vld [vmem:[%s1921_s3 + $0x8] sm:$0xff] (!%p215_p9)  ;;  %vm487_vm6 = vcmask (!%p215_p9), 523264   ;;  %vm815_vm10 = vcmask (!%p215_p9), 64512  }
  0x13   : > { %v433_v29 = vrot.slane (!%p215_p9), %v412_v27, %v432_v24  ;;  %v447_v30 = vrot.slane (!%p215_p9), %v412_v27, %v446_v25  ;;  %v1360_v5 = vpack.c.bf16 (!%p215_p9), %v664_v62, %v663_v61  ;;  %v668_v24 = vld [vmem:[%s1921_s3 + $0x28] sm:$0xff] (!%p215_p9)  ;;  %s240_s12 = sand.u32 (!%p215_p9), 1, %s1535_s22   ;;  %s1162_s14 = sshll.u32 (!%p215_p9), %s1610_s25, 7 }
  0x14   : > { %1328 = vmatpush3.bf16.msra.mxu0 (!%p215_p9), %v1327_v8  ;;  %v461_v31 = vrot.slane (!%p215_p9), %v412_v27, %v460_v26  ;;  %v427_v33 = vrot.slane (!%p215_p9), %v412_v27, %v426_v28  ;;  %v669_v26 = vld [vmem:[%s1921_s3 + $0x30] sm:$0xff] (!%p215_p9)  ;;  %v670_v27 = vld [vmem:[%s1921_s3 + $0x38] sm:$0xff] (!%p215_p9)  ;;  %s1141_s13 = sshll.u32 (!%p215_p9), %s240_s12, 3  ;;  %s1875_s19 = scalar_lea.hbm (!%p215_p9), %s1924_s6, %s1162_s14 }
  0x15   : > { %s244_s17 = scalar_select %p243_p10, %s1610_s25, 1  ;;  %1335 = vmatprep.subr.bf16.mxu0 %v1545_v3  ;;  %v1369_v28 = vpack.c.bf16 %v670_v27, %v669_v26 }
  0x16   : > { %s1065_s20 = scalar_lea.sflag [#allocation3], %s240_s12  ;;  %s1553_s25 = smov [#allocation2]  }
  0x17   : > { %s1142_s18 = sshll.u32 %s244_s17, 3  ;;  %s1485_s28 = sshll.u32 %s1553_s25, 4  ;;  %s1486_s28 = int_to_ptr.vmem [resolvable:$false] %s1485_s28 }
  0x18   : > { %s246_s26 = scalar_lea.vmem %s1918_s0, %s1142_s18  ;;  %s1487_s29 = scalar_lea.vmem %s1486_s28, 256 }
  0x19   : > { %v1675_v9 = vld [vmem:[%s246_s26] sm:$0xff] }
  0x1a   : > { %1224 = vmatmul.mubr.msk.f32.vlgmr.msra.gmra.mrb[0].mxu0 %vm252_vm1, %v1675_v9 }
  0x1b   : > { %1253 = vmatprep.mubr.msk.f32.mxu0 %vm1546_vm0, %v1547_v7  ;;  %1337 = vmatpush3.bf16.msra.mxu0 %v1336_v13  ;;  %v665_v13 = vld [vmem:[%s1921_s3 + $0x10] sm:$0xff] }
  0x1c   : > { %1338 = vmatprep.subr.bf16.mxu0 %v1545_v3 }
  0x1f   : > { %1340 = vmatpush3.bf16.msra.mxu0 %v1339_v15  ;;  %v666_v15 = vld [vmem:[%s1921_s3 + $0x18] sm:$0xff] }
  0x20   : > { %1341 = vmatprep.subr.bf16.mxu0 %v1545_v3 }
  0x23   : > { %1343 = vmatpush3.bf16.msra.mxu0 %v1342_v18  ;;  %v1363_v18 = vpack.c.bf16 %v666_v15, %v665_v13 }
  0x24   : > { %1344 = vmatprep.subr.bf16.mxu0 %v1545_v3 }
  0x27   : > { %1346 = vmatpush3.bf16.msra.mxu0 %v1345_v21  ;;  %v667_v21 = vld [vmem:[%s1921_s3 + $0x20] sm:$0xff] }
  0x28   : > { %1359 = vmatprep.subr.bf16.mxu0 %v1545_v3  ;;  %v1366_v25 = vpack.c.bf16 %v668_v24, %v667_v21 }
  0xed   : > { %v322_v32 = vpop.f32.mrb[0].mxu0 }
  0xee   : > { %v414_v34 = vrot.slane %v322_v32, 5  ;;  %v1225_v35 = vpop.f32.mrb[1].mxu0 }
  0xf0   : > { %v417_v36 = vsel %vm416_vm2, 0.0, %v414_v34  ;;  %v435_v38 = vmul.f32 %v433_v29, %v414_v34  ;;  %v449_v39 = vmul.f32 %v447_v30, %v414_v34  ;;  %v463_v40 = vmul.f32 %v461_v31, %v414_v34 }
  0xf1   : > { %v428_v41 = vmul.f32 %v427_v33, %v417_v36  ;;  %v434_v42 = vmul.f32 %v433_v29, %v417_v36  ;;  %v448_v43 = vmul.f32 %v447_v30, %v417_v36  ;;  %v462_v44 = vmul.f32 %v461_v31, %v417_v36  ;;  %v1149_v33 = vld [vmem:[%s1922_s4 + $0x6] ss:$0 sm:$0xff] }
  0xf2   : > { %v440_v45 = vrot.slane %v435_v38, 1  ;;  %v454_v49 = vrot.slane %v449_v39, 2  ;;  %v468_v52 = vrot.slane %v463_v40, 3  ;;  %v1548_v29 = vmov 2  }
  0xf3   : > { %v429_v46 = vadd.f32 %v1145_v37, %v428_v41  ;;  %v439_v47 = vrot.slane %v434_v42, 1  ;;  %v453_v48 = vrot.slane %v448_v43, 2  ;;  %v467_v51 = vrot.slane %v462_v44, 3  ;;  %1432 = vset.pattern.permute.xlu1 %v1548_v29 }
  0xf4   : > { %v1549_v30 = vmov 0  }
  0xf5   : > { %v441_v50 = vsel %vm438_vm3, %v439_v47, %v440_v45  ;;  %v455_v54 = vsel %vm452_vm4, %v453_v48, %v454_v49  ;;  %v469_v56 = vsel %vm466_vm5, %v467_v51, %v468_v52  ;;  %1430 = vset.pattern.permute.xlu0 %v1549_v30  ;;  %v1550_v52 = vmov 3  }
  0xf6   : > { %v443_v53 = vadd.f32 %v441_v50, %v429_v46 }
  0xf8   : > { %v457_v55 = vadd.f32 %v455_v54, %v443_v53  ;;  %v1551_v53 = vmov 1   ;;  %v1439_v54 = vpack.i.bf16 %v1660_v6, %v1650_v2  ;;  %v1459_v2 = vpack.i.bf16 %v1728_v20, %v1723_v19  ;;  %v1152_v6 = vld [vmem:[%s1922_s4 + $0x8] ss:$0 sm:$0xff] }
  0xfa   : > { %v471_v57 = vadd.f32 %v469_v56, %v457_v55  ;;  %v1444_v55 = vpack.i.bf16 %v1690_v11, %v1685_v10  ;;  %v1449_v56 = vpack.i.bf16 %v1702_v14, %v1695_v12  ;;  %v1153_v10 = vld [vmem:[%s1922_s4 + $0x9] ss:$0 sm:$0xff]  ;;  %v811_v14 = vand.u32 127, %v424_v22 }
  0xfc   : > { %v1146_v58 = vmul.f32 -1.442695, %v471_v57  ;;  %vm812_vm9 = vcmp.ge.s32.totalorder %v1735_v23, %v811_v14 }
  0xfd   : > { %v1155_v21 = vsel %vm812_vm9, 1.0, %v1547_v7 }
  0xfe   : > { %1465 = vpow2.f32 %v1146_v58 }
 0x108   : > { %v1466_v59 = vpop.eup %1465 }
 0x109   : > { %v475_v60 = vadd.f32 1.0, %v1466_v59 }
 0x10b   : > { %1467 = vrcp.f32 %v475_v60 }
 0x115   : > { %v1468_v63 = vpop.eup %1467 }
 0x116   : > { %v1753_v8 = vmul.f32 %v1468_v63, %v471_v57  ;;  %v1454_v57 = vpack.i.bf16 %v1715_v17, %v1710_v16  ;;  %v1154_v17 = vld [vmem:[%s1922_s4 + $0xa] ss:$0 sm:$0xff] }
 0x118   : > { %1254 = vmatmul.mubr.msk.f32.vlgmr.msra.gmra.mrb[2].mxu0 %vm487_vm6, %v1753_v8 }
 0x119   : > { %1361 = vmatpush3.bf16.msra.mxu0 %v1360_v5  ;;  %1291 = vmatprep.mubr.msk.f32.mxu0 %vm1546_vm0, %v1547_v7 }
 0x11a   : > { %1362 = vmatprep.subr.bf16.mxu0 %v1545_v3 }
 0x11d   : > { %1364 = vmatpush3.bf16.msra.mxu0 %v1363_v18 }
 0x11e   : > { %1365 = vmatprep.subr.bf16.mxu0 %v1545_v3 }
 0x121   : > { %1367 = vmatpush3.bf16.msra.mxu0 %v1366_v25 }
 0x122   : > { %1368 = vmatprep.subr.bf16.mxu0 %v1545_v3 }
 0x125   : > { %1370 = vmatpush3.bf16.msra.mxu0 %v1369_v28 }
 0x126   : > { %1294 = vmatprep.subr.mxu0 %v1547_v7 }
 0x128   : > { %1292 = vmatmul.mubr.msk.f32.vlgmr.msra.gmra.mrb[4].mxu0 %vm487_vm6, %v1753_v8 }
 0x129   : > { %1296 = vmatprep.mubr.msk.f32.mxu0 %vm1546_vm0, %v1547_v7 }
 0x1eb   : > { %v1785_v31 = vpop.f32.mrb[2].mxu0 }
 0x1ec   : > { %v1255_v32 = vpop.f32.mrb[3].mxu0 }
 0x1fb   : > { %v742_v34 = vpop.f32.mrb[4].mxu0 }
 0x1fc   : > { %v743_v35 = vadd.f32 %v1149_v33, %v742_v34  ;;  %v1293_v36 = vpop.f32.mrb[5].mxu0 }
 0x1fe   : > { %v749_v37 = vand.u32 2147483647, %v743_v35  ;;  %v746_v48 = vmax.f32 %v743_v35, 0.0  ;;  %vm747_vm8 = vcmp.ne.f32.partialorder %v743_v35, %v743_v35 }
 0x200   : > { %v750_v38 = vsub.f32 0.0, %v749_v37 }
 0x202   : > { %v751_v39 = vmul.f32 1.442695, %v750_v38 }
 0x204   : > { %1469 = vpow2.f32 %v751_v39 }
 0x20e   : > { %v1470_v40 = vpop.eup %1469 }
 0x20f   : > { %v753_v41 = vadd.f32 1.0, %v1470_v40  ;;  %v756_v42 = vmul.f32 -0.5, %v1470_v40  ;;  %v759_v44 = vand.u32 2147483647, %v1470_v40 }
 0x211   : > { %1471 = vlog2.f32 %v753_v41  ;;  %v757_v43 = vadd.f32 1.0, %v756_v42  ;;  %vm760_vm7 = vcmp.lt.f32.partialorder %v759_v44, 0.0004427343 }
 0x213   : > { %v758_v47 = vmul.f32 %v1470_v40, %v757_v43 }
 0x21b   : > { %v1472_v45 = vpop.eup %1471 }
 0x21c   : > { %v755_v46 = vmul.f32 0.6931472, %v1472_v45 }
 0x21e   : > { %v761_v49 = vsel %vm760_vm7, %v758_v47, %v755_v46  ;;  %v982_v46 = vld [vmem:[%s1923_s5] sm:$0xff]  ;;  %v983_v47 = vld [vmem:[%s1923_s5 + $0x8] sm:$0xff] }
 0x21f   : > { %v762_v50 = vadd.f32 %v761_v49, %v746_v48 }
 0x221   : > { %v763_v51 = vsel %vm747_vm8, %v743_v35, %v762_v50  ;;  %v1372_v50 = vpack.c.bf16 %v983_v47, %v982_v46 }
 0x222   : > { %788 = vperm.xlu1 %1432, %v763_v51   ;;  %767 = vperm.xlu0 %1430, %v763_v51  }
 0x226   : > { %1433 = vset.pattern.permute.xlu1 %v1550_v52  ;;  %1431 = vset.pattern.permute.xlu0 %v1551_v53 }
 0x227   : > { %799 = vperm.xlu1 %1433, %v763_v51   ;;  %777 = vperm.xlu0 %1431, %v763_v51   ;;  %v984_v51 = vld [vmem:[%s1923_s5 + $0x10] sm:$0xff] }
 0x22b   : > { %1435 = vrot.lane.b32.xlu1 %v1434_v4, %s1552_s15  ;;  %1440 = vrot.lane.b32.xlu0 %v1439_v54, %s1552_s15  ;;  %v1151_v4 = vld [vmem:[%s1922_s4 + $0x7] ss:$0 sm:$0xff] }
 0x22c   : > { %1464 = vset.pattern.permute.xlu0 %v1550_v52  ;;  %v985_v52 = vld [vmem:[%s1923_s5 + $0x18] sm:$0xff] }
 0x22d   : > { %v1375_v53 = vpack.c.bf16 %v985_v52, %v984_v51 }
 0x22f   : > { %1445 = vrot.lane.b32.xlu1 %v1444_v55, %s1552_s15  ;;  %1450 = vrot.lane.b32.xlu0 %v1449_v56, %s1552_s15  ;;  %v986_v55 = vld [vmem:[%s1923_s5 + $0x20] sm:$0xff]  ;;  %v987_v56 = vld [vmem:[%s1923_s5 + $0x28] sm:$0xff] }
 0x233   : > { %1455 = vrot.lane.b32.xlu1 %v1454_v57, %s1552_s15  ;;  %1460 = vrot.lane.b32.xlu0 %v1459_v2, %s1552_s15  ;;  %v1378_v57 = vpack.c.bf16 %v987_v56, %v986_v55  ;;  %v989_v2 = vld [vmem:[%s1923_s5 + $0x38] sm:$0xff]  ;;  %s242_s15 = scalar_lea.vmem [#allocation2], %s1141_s13 }
 0x234   : > { %s1078_s16 = sshll.u32 %s242_s15, 4  ;;  %s1877_s16 = int_to_ptr.vmem [resolvable:$true] %s1078_s16 }
 0x235   : > { %s1481_s26 = scalar_lea.vmem %s1877_s16, 128  ;;  %p1488_p0 = scmp.lt.s32.totalorder %s1877_s16, %s1486_s28 }
 0x236   : > { %p1482_p11 = scmp.ne.s32.totalorder %s1877_s16, %s1481_s26  ;;  %p1489_p1 = scmp.lt.s32.totalorder %s1487_s29, %s1481_s26 }
 0x238   : > { %p1483_p12 = pnand %p1482_p11, %p1627_p5  ;;  %p1490_p2 = por %p1489_p1, %p1488_p0 }
 0x23a   : > { %p1484_p13 = pneg %p1483_p12 }
 0x23c   : > { %p1491_p3 = pnand %p1490_p2, %p1484_p13 }
 0x2a1   : > { %v789_v0 = vpop.permute.xlu1 %788  ;;  %v768_v1 = vpop.permute.xlu0 %767 }
 0x2a2   : > { %v774_v16 = vmul.f32 %v1151_v4, %v768_v1  ;;  %v795_v20 = vmul.f32 %v1153_v10, %v789_v0 }
 0x2a6   : > { %v800_v11 = vpop.permute.xlu1 %799  ;;  %v778_v12 = vpop.permute.xlu0 %777 }
 0x2a7   : > { %v784_v19 = vmul.f32 %v1152_v6, %v778_v12  ;;  %v806_v59 = vmul.f32 %v1154_v17, %v800_v11  ;;  %v1158_v12 = vld [vmem:[%s1922_s4 + $0x5] ss:$0 sm:$0xff] }
 0x2a9   : > { %v785_v58 = vadd.f32 %v784_v19, %v774_v16 }
 0x2aa   : > { %v1436_v60 = vpop.permute.xlu1 %1435  ;;  %v1441_v61 = vpop.permute.xlu0 %1440 }
 0x2ab   : > { %v796_v62 = vadd.f32 %v795_v20, %v785_v58  ;;  %v1438_v63 = vunpack.i.h.bf16 %v1436_v60  ;;  %v1437_v5 = vunpack.i.l.bf16 %v1436_v60  ;;  %v1443_v13 = vunpack.i.h.bf16 %v1441_v61 }
 0x2ac   : > { %v1442_v15 = vunpack.i.l.bf16 %v1441_v61  ;;  %v972_v20 = vmul.f32 %v1158_v12, %v1753_v8 }
 0x2ad   : > { %v807_v18 = vadd.f32 %v806_v59, %v796_v62  ;;  %v1330_v22 = vpack.c.bf16 %v1438_v63, %v1437_v5 }
 0x2ae   : > { %v1446_v24 = vpop.permute.xlu1 %1445  ;;  %v1333_v25 = vpack.c.bf16 %v1443_v13, %v1442_v15  ;;  %v1451_v23 = vpop.permute.xlu0 %1450 }
 0x2af   : > { %1331 = vmatpush3.bf16.msra.mxu1 %v1330_v22  ;;  %1295 = vmatpush3.msra.mxu0 %v807_v18  ;;  %v1448_v26 = vunpack.i.h.bf16 %v1446_v24  ;;  %v1447_v27 = vunpack.i.l.bf16 %v1446_v24  ;;  %v1453_v29 = vunpack.i.h.bf16 %v1451_v23  ;;  %v1452_v30 = vunpack.i.l.bf16 %v1451_v23 }
 0x2b0   : > { %1297 = vmatmul.mubr.msk.f32.vlgmr.msra.gmra.mrb[6].mxu0 %vm815_vm10, %v1155_v21  ;;  %1332 = vmatprep.subr.bf16.mxu1 %v1545_v3 }
 0x2b1   : > { %v1348_v28 = vpack.c.bf16 %v1448_v26, %v1447_v27  ;;  %v1351_v33 = vpack.c.bf16 %v1453_v29, %v1452_v30 }
 0x2b2   : > { %v1456_v32 = vpop.permute.xlu1 %1455  ;;  %v1461_v36 = vpop.permute.xlu0 %1460 }
 0x2b3   : > { %1334 = vmatpush3.bf16.msra.mxu1 %v1333_v25  ;;  %v1458_v34 = vunpack.i.h.bf16 %v1456_v32  ;;  %v1457_v35 = vunpack.i.l.bf16 %v1456_v32  ;;  %v1463_v38 = vunpack.i.h.bf16 %v1461_v36  ;;  %v1462_v39 = vunpack.i.l.bf16 %v1461_v36 }
 0x2b4   : > { %1347 = vmatprep.subr.bf16.mxu1 %v1545_v3 }
 0x2b5   : > { %v1354_v37 = vpack.c.bf16 %v1458_v34, %v1457_v35  ;;  %v1357_v40 = vpack.c.bf16 %v1463_v38, %v1462_v39 }
 0x2b6   : > { %1235 = vmatmul.mubr.msk.f32.vlgmr.msra.gmra.mrb[0].mxu1 %vm252_vm1, %v1675_v9 }
 0x2b7   : > { %1349 = vmatpush3.bf16.msra.mxu1 %v1348_v28  ;;  %1272 = vmatprep.mubr.msk.f32.mxu1 %vm1546_vm0, %v1547_v7 }
 0x2b8   : > { %1350 = vmatprep.subr.bf16.mxu1 %v1545_v3 }
 0x2bb   : > { %1352 = vmatpush3.bf16.msra.mxu1 %v1351_v33 }
 0x2bc   : > { %1353 = vmatprep.subr.bf16.mxu1 %v1545_v3 }
 0x2bf   : > { %1355 = vmatpush3.bf16.msra.mxu1 %v1354_v37 }
 0x2c0   : > { %1356 = vmatprep.subr.bf16.mxu1 %v1545_v3 }
 0x2c3   : > { %1358 = vmatpush3.bf16.msra.mxu1 %v1357_v40 }
 0x2c4   : > { %1299 = vmatprep.subr.mxu1 %v1547_v7 }
 0x2c6   : > { %1273 = vmatmul.mubr.msk.f32.vlgmr.msra.gmra.mrb[2].mxu1 %vm487_vm6, %v1753_v8 }
 0x2c7   : > { %1301 = vmatprep.mubr.msk.f32.mxu1 %vm1546_vm0, %v1547_v7 }
 0x383   : > { %v885_v9 = vpop.f32.mrb[6].mxu0 }
 0x384   : > { %v891_v41 = vsub.f32 0.0, %v885_v9  ;;  %v1298_v42 = vpop.f32.mrb[7].mxu0  ;;  %v889_v6 = vmul.f32 1.442695, %v885_v9 }
 0x386   : > { %v892_v43 = vmul.f32 1.442695, %v891_v41 }
 0x388   : > { %1473 = vpow2.f32 %v892_v43 }
 0x389   : > { %v408_v44 = vpop.f32.mrb[0].mxu1 }
 0x38a   : > { %v1236_v45 = vpop.f32.mrb[1].mxu1  ;;  %v1159_v1 = vmul.f32 -1.442695, %v408_v44 }
 0x38c   : > { %1475 = vpow2.f32 %v1159_v1 }
 0x38d   : > { %1477 = vpow2.f32 %v889_v6 }
 0x392   : > { %v1474_v48 = vpop.eup %1473 }
 0x393   : > { %v894_v49 = vmul.f32 %v1474_v48, %v1785_v31 }
 0x395   : > { %1300 = vmatpush3.msra.mxu1 %v894_v49 }
 0x396   : > { %1302 = vmatmul.mubr.msk.f32.vlgmr.msra.gmra.mrb[4].mxu1 %vm815_vm10, %v1155_v21  ;;  %1371 = vmatprep.subr.bf16.mxu1 %v1545_v3  ;;  %v1476_v4 = vpop.eup %1475 }
 0x397   : > { %1373 = vmatpush3.bf16.msra.mxu1 %v1372_v50  ;;  %1320 = vmatprep.mubr.msk.f32.mxu1 %vm1546_vm0, %v1547_v7  ;;  %v988_v7 = vld [vmem:[%s1923_s5 + $0x30] sm:$0xff]  ;;  %v977_v10 = vadd.f32 1.0, %v1476_v4 }
 0x398   : > { %1374 = vmatprep.subr.bf16.mxu1 %v1545_v3  ;;  %v1381_v0 = vpack.c.bf16 %v989_v2, %v988_v7 }
 0x399   : > { %v659_v31 = vpop.f32.mrb[2].mxu1  ;;  %1479 = vrcp.f32 %v977_v10 }
 0x39a   : > { %v1274_v54 = vpop.f32.mrb[3].mxu1 }
 0x39b   : > { %1376 = vmatpush3.bf16.msra.mxu1 %v1375_v53 }
 0x39c   : > { %1377 = vmatprep.subr.bf16.mxu1 %v1545_v3 }
 0x39f   : > { %1379 = vmatpush3.bf16.msra.mxu1 %v1378_v57 }
 0x3a0   : > { %1380 = vmatprep.subr.bf16.mxu1 %v1545_v3  ;;  %v1478_v3 = vpop.eup %1477 }
 0x3a3   : > { %1382 = vmatpush3.bf16.msra.mxu1 %v1381_v0  ;;  %v1480_v17 = vpop.eup %1479 }
 0x3a4   : > { %v980_v58 = vmul.f32 %v1480_v17, %v408_v44 }
 0x469   : > { %v961_v11 = vpop.f32.mrb[4].mxu1 }
 0x46a   : > { %v965_v14 = vmul.f32 %v1478_v3, %v961_v11  ;;  %v1303_v16 = vpop.f32.mrb[5].mxu1 }
 0x46c   : > { %v966_v19 = vmul.f32 %v965_v14, %v659_v31 }
 0x46e   : > { %v973_v59 = vadd.f32 %v972_v20, %v966_v19 }
 0x470   : > { %v981_v60 = vmul.f32 %v980_v58, %v973_v59 }
 0x472   : > { %1321 = vmatmul.mubr.msk.f32.vlgmr.msra.gmra.mrb[6].mxu1 %vm487_vm6, %v981_v60 }
 0x545   : > { %v1059_v8 = vpop.f32.mrb[6].mxu1 }
 0x546   : > { %1063 = vst.msk [vmem:[%s242_s15] sm:$0xff] %vm252_vm1, %v1059_v8  ;;  %v1322_v61 = vpop.f32.mrb[7].mxu1 }
 0x547   : > { %1494 = shalt.err (!%p1491_p3)
}
 0x548   : > { %s1495_s9 = scalar_lea.hbm %s1875_s19, 128  ;;  %s1499_s12 = scalar_lea.hbm %s1924_s6, 256 }
 0x549   : > { %p1496_p4 = scmp.ne.s32.totalorder %s1875_s19, %s1495_s9  ;;  %p1500_p9 = scmp.lt.u32.totalorder %s1875_s19, %s1924_s6 }
 0x54a   : > { %p1501_p10 = scmp.lt.u32.totalorder %s1499_s12, %s1495_s9  ;;  %p1503_p12 = scmp.lt.u32.totalorder %s1495_s9, %s1875_s19 }
 0x54b   : > { %p1497_p7 = pnand %p1496_p4, %p1627_p5 }
 0x54c   : > { %p1502_p11 = por %p1501_p10, %p1500_p9 }
 0x54d   : > { %p1498_p8 = pneg %p1497_p7 }
 0x54e   : > { %p1504_p13 = por %p1503_p12, %p1502_p11 }
 0x550   : > { %p1505_p0 = pnand %p1504_p13, %p1498_p8 }
 0x552   : > { %1508 = shalt.err (!%p1505_p0)
}
 0x553   : > { %1383 = dma.vmem_to_hbm [thread:$0]  (%p1627_p5), %s1877_s16, 128, %s1875_s19, %s1065_s20  }
 0x554 PF: > { %p1389_p1 = scmp.ge.s32.totalorder %s1543_s24, 2  ;;  %s1090_s15 = sand.u32 1, %s1531_s21  }
 0x555   : > { %s1091_s17 = scalar_lea.sflag [#allocation3], %s1090_s15 }
 0x556   : > { %p1386_p2 = pnand %p1389_p1, %p1631_p6 }
 0x558   : > { %1526 = dma.done.wait (!%p1386_p2), %s1091_s17, 128  }
 0x559   : > { %1528 = vsyncadd (!%p1386_p2), %s1091_s17, 4294967168  ;;  %p16_p3 = scmp.ge.s32.totalorder %s1614_s27, 4   ;;  %s1927_s21 = smov %s1535_s22 }
 0x55a   : > { %s1928_s22 = smov %s1539_s23  ;;  %s1929_s23 = smov %s1625_s30 }
 0x55b   : > { %s1930_s24 = smov %s1614_s27  ;;  %18 = sbr.rel (!%p16_p3) target bundleno = 3 (0x3), region = 79 }
 0x562   :  { %1096 = vsyncpa [#allocation3], 1 }
 0x563   :  { %1098 = vsyncpa [#allocation3 + $0x1], 1 }

</bundles_post_ra>
